<compile_context>
chip_gen: v7x
topology: tpu7x:2x2x1
jax: 0.10.0
libtpu: 0.0.40
codegen_flags: <defaults>
</compile_context>

<pallas_src>
import jax
import jax.numpy as jnp
import numpy as np
from jax.experimental import pallas as pl
from jax.experimental.pallas import tpu as pltpu


def _make_kernel(num_layers, hidden_size, seq_len):
    H = hidden_size
    n_w = 2 * num_layers + 3  # layer0: (w_ih0T, w_hh0T, b0); layer l>0: (w_catT, b_l); fc: (w_fcT, b_fc)

    def kernel(*refs):
        x_ref, h0_ref, c0_ref = refs[0:3]
        w_refs = refs[3:3 + n_w]
        out_ref, h_ref, c_ref = refs[3 + n_w:]

        # Load inputs; carry recurrent state in f32 (matches PyTorch f32 LSTM state).
        x = x_ref[...].astype(jnp.float32)                       # (B, I)
        h = [h0_ref[l].astype(jnp.float32) for l in range(num_layers)]
        c = [c0_ref[l].astype(jnp.float32) for l in range(num_layers)]

        # Layer-0 params (already transposed / bias-summed by the wrapper).
        w_ih0_t = w_refs[0][...]                                 # (I, 4H)
        w_hh0_t = w_refs[1][...]                                 # (H, 4H)
        b0 = w_refs[2][...]                                      # (1, 4H)

        # Hoist the loop-invariant layer-0 input projection (x is constant in time).
        x_proj0 = jnp.dot(x, w_ih0_t, preferred_element_type=jnp.float32) + b0  # (B, 4H)

        # Upper layers: fused [input, h_prev] weight + summed bias. Read once, reuse.
        upper = [(w_refs[3 + 2 * (l - 1)][...], w_refs[4 + 2 * (l - 1)][...])
                 for l in range(1, num_layers)]                  # [(2H,4H), (1,4H)]

        w_fc_t = w_refs[n_w - 2][...]                            # (H, O)
        b_fc = w_refs[n_w - 1][...]                              # (1, O)

        def gate_update(gates, c_prev):
            # PyTorch gate order: i, f, g, o
            i_g = jax.nn.sigmoid(gates[:, 0 * H:1 * H])
            f_g = jax.nn.sigmoid(gates[:, 1 * H:2 * H])
            g_g = jnp.tanh(gates[:, 2 * H:3 * H])
            o_g = jax.nn.sigmoid(gates[:, 3 * H:4 * H])
            c_new = f_g * c_prev + i_g * g_g
            h_new = o_g * jnp.tanh(c_new)
            return h_new, c_new

        ys = []
        for _t in range(seq_len):                                # static unroll over time
            # layer 0: only the recurrent matmul is per-step
            gates = x_proj0 + jnp.dot(h[0], w_hh0_t, preferred_element_type=jnp.float32)
            h[0], c[0] = gate_update(gates, c[0])
            inp = h[0]
            # layers 1..L-1: one fused matmul per layer
            for l in range(1, num_layers):
                w_cat, b_l = upper[l - 1]
                xh = jnp.concatenate([inp, h[l]], axis=1)        # (B, 2H)
                gates = jnp.dot(xh, w_cat, preferred_element_type=jnp.float32) + b_l
                h[l], c[l] = gate_update(gates, c[l])
                inp = h[l]
            # fully-connected head on the top-layer output
            ys.append(jnp.dot(inp, w_fc_t, preferred_element_type=jnp.float32) + b_fc)

        # Lane-dense (B, S*O) slab, written once.
        out_ref[...] = jnp.concatenate(ys, axis=1).astype(out_ref.dtype)
        for l in range(num_layers):
            h_ref[l] = h[l].astype(h_ref.dtype)
            c_ref[l] = c[l].astype(c_ref.dtype)

    return kernel


def _idx2(i):
    return (0, 0)


def _idx3(i):
    return (0, 0, 0)


def _spec(shape):
    return pl.BlockSpec(shape, _idx2 if len(shape) == 2 else _idx3)


def lstm_decoder_forward(x, h0, c0, layer_params, w_fc, b_fc, sequence_length):
    """x: (B, I); h0/c0: (L, B, H); layer_params: list of (w_ih, w_hh, b_ih, b_hh).

    Returns (output (B, S, O), (h_N, c_N)) matching the PyTorch module."""
    num_layers, B, H = h0.shape
    O = w_fc.shape[0]

    # Pad batch to a sublane multiple (8). Padded rows are garbage and discarded.
    B_pad = ((B + 7) // 8) * 8
    pad = B_pad - B
    x_p = jnp.pad(x, ((0, pad), (0, 0))) if pad else x
    h0_p = jnp.pad(h0, ((0, 0), (0, pad), (0, 0))) if pad else h0
    c0_p = jnp.pad(c0, ((0, 0), (0, pad), (0, 0))) if pad else c0

    # Pack weights: pre-transpose to lane-dense (·, 4H) layouts, pre-sum the two biases,
    # and fuse the per-layer (input, hidden) weights for layers >= 1.
    w_ih0, w_hh0, b_ih0, b_hh0 = layer_params[0]
    packed = [jnp.transpose(w_ih0),                  # (I, 4H)
              jnp.transpose(w_hh0),                  # (H, 4H)
              (b_ih0 + b_hh0).reshape(1, -1)]        # (1, 4H)
    for l in range(1, num_layers):
        w_ih, w_hh, b_ih, b_hh = layer_params[l]
        packed.append(jnp.concatenate([jnp.transpose(w_ih), jnp.transpose(w_hh)], axis=0))  # (2H, 4H)
        packed.append((b_ih + b_hh).reshape(1, -1))                                          # (1, 4H)
    packed.append(jnp.transpose(w_fc))               # (H, O)
    packed.append(b_fc.reshape(1, -1))               # (1, O)

    inputs = (x_p, h0_p, c0_p, *packed)
    in_specs = [_spec(a.shape) for a in inputs]

    out_shapes = (
        jax.ShapeDtypeStruct((B_pad, sequence_length * O), x.dtype),  # lane-dense output slab
        jax.ShapeDtypeStruct((num_layers, B_pad, H), x.dtype),        # h_N
        jax.ShapeDtypeStruct((num_layers, B_pad, H), x.dtype),        # c_N
    )
    out_specs = tuple(_spec(s.shape) for s in out_shapes)

    kernel = _make_kernel(num_layers, H, sequence_length)

    out_slab, h_n, c_n = pl.pallas_call(
        kernel,
        out_shape=out_shapes,
        grid_spec=pltpu.PrefetchScalarGridSpec(
            num_scalar_prefetch=0,
            grid=(1,),                                # single step; time is unrolled in-kernel
            in_specs=in_specs,
            out_specs=out_specs,
        ),
        compiler_params=pltpu.CompilerParams(
            dimension_semantics=("arbitrary",),
        ),
    )(*inputs)

    # (B, S*O) -> (B, S, O): pure reshape (column order is already [t0 | t1 | ...]).
    out = out_slab[:B].reshape(B, sequence_length, O)
    return out, (h_n[:, :B, :], c_n[:, :B, :])


def ref_forward(x, h0, c0, layer_params, w_fc, b_fc, sequence_length):
    """Pure-JAX reference mirroring the PyTorch forward."""
    num_layers = h0.shape[0]
    H = h0.shape[-1]
    h = [h0[l] for l in range(num_layers)]
    c = [c0[l] for l in range(num_layers)]
    outs = []
    for _ in range(sequence_length):
        inp = x
        for l in range(num_layers):
            w_ih, w_hh, b_ih, b_hh = layer_params[l]
            gates = inp @ w_ih.T + b_ih + h[l] @ w_hh.T + b_hh
            i_g = jax.nn.sigmoid(gates[:, 0 * H:1 * H])
            f_g = jax.nn.sigmoid(gates[:, 1 * H:2 * H])
            g_g = jnp.tanh(gates[:, 2 * H:3 * H])
            o_g = jax.nn.sigmoid(gates[:, 3 * H:4 * H])
            c[l] = f_g * c[l] + i_g * g_g
            h[l] = o_g * jnp.tanh(c[l])
            inp = h[l]
        outs.append(inp @ w_fc.T + b_fc)
    return jnp.stack(outs, 1), (jnp.stack(h), jnp.stack(c))


if __name__ == "__main__":
    # Small shapes consistent with the module.
    batch = 2
    input_size = 16
    hidden_size = 32
    output_size = 16
    sequence_length = 8
    num_layers = 2

    key = jax.random.PRNGKey(0)
    k_iter = iter(jax.random.split(key, 4 * num_layers + 2 + 3))
    bound = 1.0 / np.sqrt(hidden_size)

    def u(k, shape):
        return jax.random.uniform(k, shape, jnp.float32, -bound, bound)

    layer_params = []
    for l in range(num_layers):
        in_l = input_size if l == 0 else hidden_size
        w_ih = u(next(k_iter), (4 * hidden_size, in_l))
        w_hh = u(next(k_iter), (4 * hidden_size, hidden_size))
        b_ih = u(next(k_iter), (4 * hidden_size,))
        b_hh = u(next(k_iter), (4 * hidden_size,))
        layer_params.append((w_ih, w_hh, b_ih, b_hh))
    w_fc = u(next(k_iter), (output_size, hidden_size))
    b_fc = u(next(k_iter), (output_size,))

    # PyTorch input is (B, 1, input_size); squeeze the singleton seq dim for the kernel.
    x = jax.random.normal(next(k_iter), (batch, input_size), jnp.float32)
    h0 = jax.random.normal(next(k_iter), (num_layers, batch, hidden_size), jnp.float32)
    c0 = jax.random.normal(next(k_iter), (num_layers, batch, hidden_size), jnp.float32)

    out, (h_n, c_n) = lstm_decoder_forward(
        x, h0, c0, layer_params, w_fc, b_fc, sequence_length)
    out = jax.block_until_ready(out)
    h_n = jax.block_until_ready(h_n)
    c_n = jax.block_until_ready(c_n)

    out_ref, (h_ref, c_ref) = ref_forward(
        x, h0, c0, layer_params, w_fc, b_fc, sequence_length)

    np.testing.assert_allclose(np.asarray(out), np.asarray(out_ref), rtol=1e-3, atol=1e-3)
    np.testing.assert_allclose(np.asarray(h_n), np.asarray(h_ref), rtol=1e-3, atol=1e-3)
    np.testing.assert_allclose(np.asarray(c_n), np.asarray(c_ref), rtol=1e-3, atol=1e-3)

    assert out.shape == (batch, sequence_length, output_size)
    assert h_n.shape == (num_layers, batch, hidden_size)
    assert c_n.shape == (num_layers, batch, hidden_size)

    print("KERNEL_OK")
</pallas_src>

<mosaic_0001>
module attributes {stable_mosaic.version = 11 : i64} {
  func.func @kernel(%arg0: i32, %arg1: memref<8x16xf32, #tpu.memory_space<vmem>>, %arg2: memref<2x8x32xf32, #tpu.memory_space<vmem>>, %arg3: memref<2x8x32xf32, #tpu.memory_space<vmem>>, %arg4: memref<16x128xf32, #tpu.memory_space<vmem>>, %arg5: memref<32x128xf32, #tpu.memory_space<vmem>>, %arg6: memref<1x128xf32, #tpu.memory_space<vmem>>, %arg7: memref<64x128xf32, #tpu.memory_space<vmem>>, %arg8: memref<1x128xf32, #tpu.memory_space<vmem>>, %arg9: memref<32x16xf32, #tpu.memory_space<vmem>>, %arg10: memref<1x16xf32, #tpu.memory_space<vmem>>, %arg11: memref<8x128xf32, #tpu.memory_space<vmem>>, %arg12: memref<2x8x32xf32, #tpu.memory_space<vmem>>, %arg13: memref<2x8x32xf32, #tpu.memory_space<vmem>>) attributes {dimension_semantics = [#tpu.dimension_semantics<arbitrary>], iteration_bounds = array<i64: 1>, scalar_prefetch = 0 : i64, scratch_operands = 0 : i64, tpu.core_type = #tpu.core_type<tc>, window_params = [{pipeline_mode = #tpu.pipeline_mode<synchronous>, transform_indices = @transform_0, window_bounds = array<i64: 8, 16>}, {pipeline_mode = #tpu.pipeline_mode<synchronous>, transform_indices = @transform_1, window_bounds = array<i64: 2, 8, 32>}, {pipeline_mode = #tpu.pipeline_mode<synchronous>, transform_indices = @transform_2, window_bounds = array<i64: 2, 8, 32>}, {pipeline_mode = #tpu.pipeline_mode<synchronous>, transform_indices = @transform_3, window_bounds = array<i64: 16, 128>}, {pipeline_mode = #tpu.pipeline_mode<synchronous>, transform_indices = @transform_4, window_bounds = array<i64: 32, 128>}, {pipeline_mode = #tpu.pipeline_mode<synchronous>, transform_indices = @transform_5, window_bounds = array<i64: 1, 128>}, {pipeline_mode = #tpu.pipeline_mode<synchronous>, transform_indices = @transform_6, window_bounds = array<i64: 64, 128>}, {pipeline_mode = #tpu.pipeline_mode<synchronous>, transform_indices = @transform_7, window_bounds = array<i64: 1, 128>}, {pipeline_mode = #tpu.pipeline_mode<synchronous>, transform_indices = @transform_8, window_bounds = array<i64: 32, 16>}, {pipeline_mode = #tpu.pipeline_mode<synchronous>, transform_indices = @transform_9, window_bounds = array<i64: 1, 16>}, {pipeline_mode = #tpu.pipeline_mode<synchronous>, transform_indices = @transform_10, window_bounds = array<i64: 8, 128>}, {pipeline_mode = #tpu.pipeline_mode<synchronous>, transform_indices = @transform_11, window_bounds = array<i64: 2, 8, 32>}, {pipeline_mode = #tpu.pipeline_mode<synchronous>, transform_indices = @transform_12, window_bounds = array<i64: 2, 8, 32>}]} {
    %c0 = arith.constant 0 : index
    %c0_0 = arith.constant 0 : index
    %0 = vector.load %arg1[%c0, %c0_0] : memref<8x16xf32, #tpu.memory_space<vmem>>, vector<8x16xf32>
    %c0_1 = arith.constant 0 : index
    %c0_2 = arith.constant 0 : index
    %c0_3 = arith.constant 0 : index
    %1 = vector.load %arg2[%c0_1, %c0_2, %c0_3] : memref<2x8x32xf32, #tpu.memory_space<vmem>>, vector<1x8x32xf32>
    %2 = vector.shape_cast %1 : vector<1x8x32xf32> to vector<8x32xf32>
    %c1 = arith.constant 1 : index
    %c0_4 = arith.constant 0 : index
    %c0_5 = arith.constant 0 : index
    %3 = vector.load %arg2[%c1, %c0_4, %c0_5] : memref<2x8x32xf32, #tpu.memory_space<vmem>>, vector<1x8x32xf32>
    %4 = vector.shape_cast %3 : vector<1x8x32xf32> to vector<8x32xf32>
    %c0_6 = arith.constant 0 : index
    %c0_7 = arith.constant 0 : index
    %c0_8 = arith.constant 0 : index
    %5 = vector.load %arg3[%c0_6, %c0_7, %c0_8] : memref<2x8x32xf32, #tpu.memory_space<vmem>>, vector<1x8x32xf32>
    %6 = vector.shape_cast %5 : vector<1x8x32xf32> to vector<8x32xf32>
    %c1_9 = arith.constant 1 : index
    %c0_10 = arith.constant 0 : index
    %c0_11 = arith.constant 0 : index
    %7 = vector.load %arg3[%c1_9, %c0_10, %c0_11] : memref<2x8x32xf32, #tpu.memory_space<vmem>>, vector<1x8x32xf32>
    %8 = vector.shape_cast %7 : vector<1x8x32xf32> to vector<8x32xf32>
    %c0_12 = arith.constant 0 : index
    %c0_13 = arith.constant 0 : index
    %9 = vector.load %arg4[%c0_12, %c0_13] : memref<16x128xf32, #tpu.memory_space<vmem>>, vector<16x128xf32>
    %c0_14 = arith.constant 0 : index
    %c0_15 = arith.constant 0 : index
    %10 = vector.load %arg5[%c0_14, %c0_15] : memref<32x128xf32, #tpu.memory_space<vmem>>, vector<32x128xf32>
    %c0_16 = arith.constant 0 : index
    %c0_17 = arith.constant 0 : index
    %11 = vector.load %arg6[%c0_16, %c0_17] : memref<1x128xf32, #tpu.memory_space<vmem>>, vector<1x128xf32>
    %cst = arith.constant dense<0.000000e+00> : vector<8x128xf32>
    %12 = tpu.matmul %0, %9, %cst {dimension_numbers = #tpu.dot_dimension_numbers<[1], [0], [0], [1], [0, 0, 1, 1], [], []>} : vector<8x16xf32>, vector<16x128xf32>, vector<8x128xf32> -> vector<8x128xf32>
    %13 = vector.broadcast %11 : vector<1x128xf32> to vector<8x128xf32>
    %14 = arith.addf %12, %13 : vector<8x128xf32>
    %c0_18 = arith.constant 0 : index
    %c0_19 = arith.constant 0 : index
    %15 = vector.load %arg7[%c0_18, %c0_19] : memref<64x128xf32, #tpu.memory_space<vmem>>, vector<64x128xf32>
    %c0_20 = arith.constant 0 : index
    %c0_21 = arith.constant 0 : index
    %16 = vector.load %arg8[%c0_20, %c0_21] : memref<1x128xf32, #tpu.memory_space<vmem>>, vector<1x128xf32>
    %c0_22 = arith.constant 0 : index
    %c0_23 = arith.constant 0 : index
    %17 = vector.load %arg9[%c0_22, %c0_23] : memref<32x16xf32, #tpu.memory_space<vmem>>, vector<32x16xf32>
    %c0_24 = arith.constant 0 : index
    %c0_25 = arith.constant 0 : index
    %18 = vector.load %arg10[%c0_24, %c0_25] : memref<1x16xf32, #tpu.memory_space<vmem>>, vector<1x16xf32>
    %cst_26 = arith.constant dense<0.000000e+00> : vector<8x128xf32>
    %19 = tpu.matmul %2, %10, %cst_26 {dimension_numbers = #tpu.dot_dimension_numbers<[1], [0], [0], [1], [0, 0, 1, 1], [], []>} : vector<8x32xf32>, vector<32x128xf32>, vector<8x128xf32> -> vector<8x128xf32>
    %20 = arith.addf %14, %19 : vector<8x128xf32>
    %21 = vector.extract_strided_slice %20 {offsets = [0, 0], sizes = [8, 32], strides = [1, 1]} : vector<8x128xf32> to vector<8x32xf32>
    %22 = arith.negf %21 : vector<8x32xf32>
    %23 = math.exp %22 : vector<8x32xf32>
    %cst_27 = arith.constant 1.000000e+00 : f32
    %24 = vector.broadcast %cst_27 : f32 to vector<8x32xf32>
    %25 = arith.addf %24, %23 : vector<8x32xf32>
    %26 = arith.divf %24, %25 : vector<8x32xf32>
    %27 = vector.extract_strided_slice %20 {offsets = [0, 32], sizes = [8, 32], strides = [1, 1]} : vector<8x128xf32> to vector<8x32xf32>
    %28 = arith.negf %27 : vector<8x32xf32>
    %29 = math.exp %28 : vector<8x32xf32>
    %cst_28 = arith.constant 1.000000e+00 : f32
    %30 = vector.broadcast %cst_28 : f32 to vector<8x32xf32>
    %31 = arith.addf %30, %29 : vector<8x32xf32>
    %32 = arith.divf %30, %31 : vector<8x32xf32>
    %33 = vector.extract_strided_slice %20 {offsets = [0, 64], sizes = [8, 32], strides = [1, 1]} : vector<8x128xf32> to vector<8x32xf32>
    %34 = math.tanh %33 : vector<8x32xf32>
    %35 = vector.extract_strided_slice %20 {offsets = [0, 96], sizes = [8, 32], strides = [1, 1]} : vector<8x128xf32> to vector<8x32xf32>
    %36 = arith.negf %35 : vector<8x32xf32>
    %37 = math.exp %36 : vector<8x32xf32>
    %cst_29 = arith.constant 1.000000e+00 : f32
    %38 = vector.broadcast %cst_29 : f32 to vector<8x32xf32>
    %39 = arith.addf %38, %37 : vector<8x32xf32>
    %40 = arith.divf %38, %39 : vector<8x32xf32>
    %41 = arith.mulf %32, %6 : vector<8x32xf32>
    %42 = arith.mulf %26, %34 : vector<8x32xf32>
    %43 = arith.addf %41, %42 : vector<8x32xf32>
    %44 = math.tanh %43 : vector<8x32xf32>
    %45 = arith.mulf %40, %44 : vector<8x32xf32>
    %46 = tpu.concatenate %45, %4 in 1 : vector<8x32xf32>, vector<8x32xf32> -> vector<8x64xf32>
    %cst_30 = arith.constant dense<0.000000e+00> : vector<8x128xf32>
    %47 = tpu.matmul %46, %15, %cst_30 {dimension_numbers = #tpu.dot_dimension_numbers<[1], [0], [0], [1], [0, 0, 1, 1], [], []>} : vector<8x64xf32>, vector<64x128xf32>, vector<8x128xf32> -> vector<8x128xf32>
    %48 = vector.broadcast %16 : vector<1x128xf32> to vector<8x128xf32>
    %49 = arith.addf %47, %48 : vector<8x128xf32>
    %50 = vector.extract_strided_slice %49 {offsets = [0, 0], sizes = [8, 32], strides = [1, 1]} : vector<8x128xf32> to vector<8x32xf32>
    %51 = arith.negf %50 : vector<8x32xf32>
    %52 = math.exp %51 : vector<8x32xf32>
    %cst_31 = arith.constant 1.000000e+00 : f32
    %53 = vector.broadcast %cst_31 : f32 to vector<8x32xf32>
    %54 = arith.addf %53, %52 : vector<8x32xf32>
    %55 = arith.divf %53, %54 : vector<8x32xf32>
    %56 = vector.extract_strided_slice %49 {offsets = [0, 32], sizes = [8, 32], strides = [1, 1]} : vector<8x128xf32> to vector<8x32xf32>
    %57 = arith.negf %56 : vector<8x32xf32>
    %58 = math.exp %57 : vector<8x32xf32>
    %cst_32 = arith.constant 1.000000e+00 : f32
    %59 = vector.broadcast %cst_32 : f32 to vector<8x32xf32>
    %60 = arith.addf %59, %58 : vector<8x32xf32>
    %61 = arith.divf %59, %60 : vector<8x32xf32>
    %62 = vector.extract_strided_slice %49 {offsets = [0, 64], sizes = [8, 32], strides = [1, 1]} : vector<8x128xf32> to vector<8x32xf32>
    %63 = math.tanh %62 : vector<8x32xf32>
    %64 = vector.extract_strided_slice %49 {offsets = [0, 96], sizes = [8, 32], strides = [1, 1]} : vector<8x128xf32> to vector<8x32xf32>
    %65 = arith.negf %64 : vector<8x32xf32>
    %66 = math.exp %65 : vector<8x32xf32>
    %cst_33 = arith.constant 1.000000e+00 : f32
    %67 = vector.broadcast %cst_33 : f32 to vector<8x32xf32>
    %68 = arith.addf %67, %66 : vector<8x32xf32>
    %69 = arith.divf %67, %68 : vector<8x32xf32>
    %70 = arith.mulf %61, %8 : vector<8x32xf32>
    %71 = arith.mulf %55, %63 : vector<8x32xf32>
    %72 = arith.addf %70, %71 : vector<8x32xf32>
    %73 = math.tanh %72 : vector<8x32xf32>
    %74 = arith.mulf %69, %73 : vector<8x32xf32>
    %cst_34 = arith.constant dense<0.000000e+00> : vector<8x16xf32>
    %75 = tpu.matmul %74, %17, %cst_34 {dimension_numbers = #tpu.dot_dimension_numbers<[1], [0], [0], [1], [0, 0, 1, 1], [], []>} : vector<8x32xf32>, vector<32x16xf32>, vector<8x16xf32> -> vector<8x16xf32>
    %76 = vector.broadcast %18 : vector<1x16xf32> to vector<8x16xf32>
    %77 = arith.addf %75, %76 : vector<8x16xf32>
    %cst_35 = arith.constant dense<0.000000e+00> : vector<8x128xf32>
    %78 = tpu.matmul %45, %10, %cst_35 {dimension_numbers = #tpu.dot_dimension_numbers<[1], [0], [0], [1], [0, 0, 1, 1], [], []>} : vector<8x32xf32>, vector<32x128xf32>, vector<8x128xf32> -> vector<8x128xf32>
    %79 = arith.addf %14, %78 : vector<8x128xf32>
    %80 = vector.extract_strided_slice %79 {offsets = [0, 0], sizes = [8, 32], strides = [1, 1]} : vector<8x128xf32> to vector<8x32xf32>
    %81 = arith.negf %80 : vector<8x32xf32>
    %82 = math.exp %81 : vector<8x32xf32>
    %cst_36 = arith.constant 1.000000e+00 : f32
    %83 = vector.broadcast %cst_36 : f32 to vector<8x32xf32>
    %84 = arith.addf %83, %82 : vector<8x32xf32>
    %85 = arith.divf %83, %84 : vector<8x32xf32>
    %86 = vector.extract_strided_slice %79 {offsets = [0, 32], sizes = [8, 32], strides = [1, 1]} : vector<8x128xf32> to vector<8x32xf32>
    %87 = arith.negf %86 : vector<8x32xf32>
    %88 = math.exp %87 : vector<8x32xf32>
    %cst_37 = arith.constant 1.000000e+00 : f32
    %89 = vector.broadcast %cst_37 : f32 to vector<8x32xf32>
    %90 = arith.addf %89, %88 : vector<8x32xf32>
    %91 = arith.divf %89, %90 : vector<8x32xf32>
    %92 = vector.extract_strided_slice %79 {offsets = [0, 64], sizes = [8, 32], strides = [1, 1]} : vector<8x128xf32> to vector<8x32xf32>
    %93 = math.tanh %92 : vector<8x32xf32>
    %94 = vector.extract_strided_slice %79 {offsets = [0, 96], sizes = [8, 32], strides = [1, 1]} : vector<8x128xf32> to vector<8x32xf32>
    %95 = arith.negf %94 : vector<8x32xf32>
    %96 = math.exp %95 : vector<8x32xf32>
    %cst_38 = arith.constant 1.000000e+00 : f32
    %97 = vector.broadcast %cst_38 : f32 to vector<8x32xf32>
    %98 = arith.addf %97, %96 : vector<8x32xf32>
    %99 = arith.divf %97, %98 : vector<8x32xf32>
    %100 = arith.mulf %91, %43 : vector<8x32xf32>
    %101 = arith.mulf %85, %93 : vector<8x32xf32>
    %102 = arith.addf %100, %101 : vector<8x32xf32>
    %103 = math.tanh %102 : vector<8x32xf32>
    %104 = arith.mulf %99, %103 : vector<8x32xf32>
    %105 = tpu.concatenate %104, %74 in 1 : vector<8x32xf32>, vector<8x32xf32> -> vector<8x64xf32>
    %cst_39 = arith.constant dense<0.000000e+00> : vector<8x128xf32>
    %106 = tpu.matmul %105, %15, %cst_39 {dimension_numbers = #tpu.dot_dimension_numbers<[1], [0], [0], [1], [0, 0, 1, 1], [], []>} : vector<8x64xf32>, vector<64x128xf32>, vector<8x128xf32> -> vector<8x128xf32>
    %107 = vector.broadcast %16 : vector<1x128xf32> to vector<8x128xf32>
    %108 = arith.addf %106, %107 : vector<8x128xf32>
    %109 = vector.extract_strided_slice %108 {offsets = [0, 0], sizes = [8, 32], strides = [1, 1]} : vector<8x128xf32> to vector<8x32xf32>
    %110 = arith.negf %109 : vector<8x32xf32>
    %111 = math.exp %110 : vector<8x32xf32>
    %cst_40 = arith.constant 1.000000e+00 : f32
    %112 = vector.broadcast %cst_40 : f32 to vector<8x32xf32>
    %113 = arith.addf %112, %111 : vector<8x32xf32>
    %114 = arith.divf %112, %113 : vector<8x32xf32>
    %115 = vector.extract_strided_slice %108 {offsets = [0, 32], sizes = [8, 32], strides = [1, 1]} : vector<8x128xf32> to vector<8x32xf32>
    %116 = arith.negf %115 : vector<8x32xf32>
    %117 = math.exp %116 : vector<8x32xf32>
    %cst_41 = arith.constant 1.000000e+00 : f32
    %118 = vector.broadcast %cst_41 : f32 to vector<8x32xf32>
    %119 = arith.addf %118, %117 : vector<8x32xf32>
    %120 = arith.divf %118, %119 : vector<8x32xf32>
    %121 = vector.extract_strided_slice %108 {offsets = [0, 64], sizes = [8, 32], strides = [1, 1]} : vector<8x128xf32> to vector<8x32xf32>
    %122 = math.tanh %121 : vector<8x32xf32>
    %123 = vector.extract_strided_slice %108 {offsets = [0, 96], sizes = [8, 32], strides = [1, 1]} : vector<8x128xf32> to vector<8x32xf32>
    %124 = arith.negf %123 : vector<8x32xf32>
    %125 = math.exp %124 : vector<8x32xf32>
    %cst_42 = arith.constant 1.000000e+00 : f32
    %126 = vector.broadcast %cst_42 : f32 to vector<8x32xf32>
    %127 = arith.addf %126, %125 : vector<8x32xf32>
    %128 = arith.divf %126, %127 : vector<8x32xf32>
    %129 = arith.mulf %120, %72 : vector<8x32xf32>
    %130 = arith.mulf %114, %122 : vector<8x32xf32>
    %131 = arith.addf %129, %130 : vector<8x32xf32>
    %132 = math.tanh %131 : vector<8x32xf32>
    %133 = arith.mulf %128, %132 : vector<8x32xf32>
    %cst_43 = arith.constant dense<0.000000e+00> : vector<8x16xf32>
    %134 = tpu.matmul %133, %17, %cst_43 {dimension_numbers = #tpu.dot_dimension_numbers<[1], [0], [0], [1], [0, 0, 1, 1], [], []>} : vector<8x32xf32>, vector<32x16xf32>, vector<8x16xf32> -> vector<8x16xf32>
    %135 = vector.broadcast %18 : vector<1x16xf32> to vector<8x16xf32>
    %136 = arith.addf %134, %135 : vector<8x16xf32>
    %cst_44 = arith.constant dense<0.000000e+00> : vector<8x128xf32>
    %137 = tpu.matmul %104, %10, %cst_44 {dimension_numbers = #tpu.dot_dimension_numbers<[1], [0], [0], [1], [0, 0, 1, 1], [], []>} : vector<8x32xf32>, vector<32x128xf32>, vector<8x128xf32> -> vector<8x128xf32>
    %138 = arith.addf %14, %137 : vector<8x128xf32>
    %139 = vector.extract_strided_slice %138 {offsets = [0, 0], sizes = [8, 32], strides = [1, 1]} : vector<8x128xf32> to vector<8x32xf32>
    %140 = arith.negf %139 : vector<8x32xf32>
    %141 = math.exp %140 : vector<8x32xf32>
    %cst_45 = arith.constant 1.000000e+00 : f32
    %142 = vector.broadcast %cst_45 : f32 to vector<8x32xf32>
    %143 = arith.addf %142, %141 : vector<8x32xf32>
    %144 = arith.divf %142, %143 : vector<8x32xf32>
    %145 = vector.extract_strided_slice %138 {offsets = [0, 32], sizes = [8, 32], strides = [1, 1]} : vector<8x128xf32> to vector<8x32xf32>
    %146 = arith.negf %145 : vector<8x32xf32>
    %147 = math.exp %146 : vector<8x32xf32>
    %cst_46 = arith.constant 1.000000e+00 : f32
    %148 = vector.broadcast %cst_46 : f32 to vector<8x32xf32>
    %149 = arith.addf %148, %147 : vector<8x32xf32>
    %150 = arith.divf %148, %149 : vector<8x32xf32>
    %151 = vector.extract_strided_slice %138 {offsets = [0, 64], sizes = [8, 32], strides = [1, 1]} : vector<8x128xf32> to vector<8x32xf32>
    %152 = math.tanh %151 : vector<8x32xf32>
    %153 = vector.extract_strided_slice %138 {offsets = [0, 96], sizes = [8, 32], strides = [1, 1]} : vector<8x128xf32> to vector<8x32xf32>
    %154 = arith.negf %153 : vector<8x32xf32>
    %155 = math.exp %154 : vector<8x32xf32>
    %cst_47 = arith.constant 1.000000e+00 : f32
    %156 = vector.broadcast %cst_47 : f32 to vector<8x32xf32>
    %157 = arith.addf %156, %155 : vector<8x32xf32>
    %158 = arith.divf %156, %157 : vector<8x32xf32>
    %159 = arith.mulf %150, %102 : vector<8x32xf32>
    %160 = arith.mulf %144, %152 : vector<8x32xf32>
    %161 = arith.addf %159, %160 : vector<8x32xf32>
    %162 = math.tanh %161 : vector<8x32xf32>
    %163 = arith.mulf %158, %162 : vector<8x32xf32>
    %164 = tpu.concatenate %163, %133 in 1 : vector<8x32xf32>, vector<8x32xf32> -> vector<8x64xf32>
    %cst_48 = arith.constant dense<0.000000e+00> : vector<8x128xf32>
    %165 = tpu.matmul %164, %15, %cst_48 {dimension_numbers = #tpu.dot_dimension_numbers<[1], [0], [0], [1], [0, 0, 1, 1], [], []>} : vector<8x64xf32>, vector<64x128xf32>, vector<8x128xf32> -> vector<8x128xf32>
    %166 = vector.broadcast %16 : vector<1x128xf32> to vector<8x128xf32>
    %167 = arith.addf %165, %166 : vector<8x128xf32>
    %168 = vector.extract_strided_slice %167 {offsets = [0, 0], sizes = [8, 32], strides = [1, 1]} : vector<8x128xf32> to vector<8x32xf32>
    %169 = arith.negf %168 : vector<8x32xf32>
    %170 = math.exp %169 : vector<8x32xf32>
    %cst_49 = arith.constant 1.000000e+00 : f32
    %171 = vector.broadcast %cst_49 : f32 to vector<8x32xf32>
    %172 = arith.addf %171, %170 : vector<8x32xf32>
    %173 = arith.divf %171, %172 : vector<8x32xf32>
    %174 = vector.extract_strided_slice %167 {offsets = [0, 32], sizes = [8, 32], strides = [1, 1]} : vector<8x128xf32> to vector<8x32xf32>
    %175 = arith.negf %174 : vector<8x32xf32>
    %176 = math.exp %175 : vector<8x32xf32>
    %cst_50 = arith.constant 1.000000e+00 : f32
    %177 = vector.broadcast %cst_50 : f32 to vector<8x32xf32>
    %178 = arith.addf %177, %176 : vector<8x32xf32>
    %179 = arith.divf %177, %178 : vector<8x32xf32>
    %180 = vector.extract_strided_slice %167 {offsets = [0, 64], sizes = [8, 32], strides = [1, 1]} : vector<8x128xf32> to vector<8x32xf32>
    %181 = math.tanh %180 : vector<8x32xf32>
    %182 = vector.extract_strided_slice %167 {offsets = [0, 96], sizes = [8, 32], strides = [1, 1]} : vector<8x128xf32> to vector<8x32xf32>
    %183 = arith.negf %182 : vector<8x32xf32>
    %184 = math.exp %183 : vector<8x32xf32>
    %cst_51 = arith.constant 1.000000e+00 : f32
    %185 = vector.broadcast %cst_51 : f32 to vector<8x32xf32>
    %186 = arith.addf %185, %184 : vector<8x32xf32>
    %187 = arith.divf %185, %186 : vector<8x32xf32>
    %188 = arith.mulf %179, %131 : vector<8x32xf32>
    %189 = arith.mulf %173, %181 : vector<8x32xf32>
    %190 = arith.addf %188, %189 : vector<8x32xf32>
    %191 = math.tanh %190 : vector<8x32xf32>
    %192 = arith.mulf %187, %191 : vector<8x32xf32>
    %cst_52 = arith.constant dense<0.000000e+00> : vector<8x16xf32>
    %193 = tpu.matmul %192, %17, %cst_52 {dimension_numbers = #tpu.dot_dimension_numbers<[1], [0], [0], [1], [0, 0, 1, 1], [], []>} : vector<8x32xf32>, vector<32x16xf32>, vector<8x16xf32> -> vector<8x16xf32>
    %194 = vector.broadcast %18 : vector<1x16xf32> to vector<8x16xf32>
    %195 = arith.addf %193, %194 : vector<8x16xf32>
    %cst_53 = arith.constant dense<0.000000e+00> : vector<8x128xf32>
    %196 = tpu.matmul %163, %10, %cst_53 {dimension_numbers = #tpu.dot_dimension_numbers<[1], [0], [0], [1], [0, 0, 1, 1], [], []>} : vector<8x32xf32>, vector<32x128xf32>, vector<8x128xf32> -> vector<8x128xf32>
    %197 = arith.addf %14, %196 : vector<8x128xf32>
    %198 = vector.extract_strided_slice %197 {offsets = [0, 0], sizes = [8, 32], strides = [1, 1]} : vector<8x128xf32> to vector<8x32xf32>
    %199 = arith.negf %198 : vector<8x32xf32>
    %200 = math.exp %199 : vector<8x32xf32>
    %cst_54 = arith.constant 1.000000e+00 : f32
    %201 = vector.broadcast %cst_54 : f32 to vector<8x32xf32>
    %202 = arith.addf %201, %200 : vector<8x32xf32>
    %203 = arith.divf %201, %202 : vector<8x32xf32>
    %204 = vector.extract_strided_slice %197 {offsets = [0, 32], sizes = [8, 32], strides = [1, 1]} : vector<8x128xf32> to vector<8x32xf32>
    %205 = arith.negf %204 : vector<8x32xf32>
    %206 = math.exp %205 : vector<8x32xf32>
    %cst_55 = arith.constant 1.000000e+00 : f32
    %207 = vector.broadcast %cst_55 : f32 to vector<8x32xf32>
    %208 = arith.addf %207, %206 : vector<8x32xf32>
    %209 = arith.divf %207, %208 : vector<8x32xf32>
    %210 = vector.extract_strided_slice %197 {offsets = [0, 64], sizes = [8, 32], strides = [1, 1]} : vector<8x128xf32> to vector<8x32xf32>
    %211 = math.tanh %210 : vector<8x32xf32>
    %212 = vector.extract_strided_slice %197 {offsets = [0, 96], sizes = [8, 32], strides = [1, 1]} : vector<8x128xf32> to vector<8x32xf32>
    %213 = arith.negf %212 : vector<8x32xf32>
    %214 = math.exp %213 : vector<8x32xf32>
    %cst_56 = arith.constant 1.000000e+00 : f32
    %215 = vector.broadcast %cst_56 : f32 to vector<8x32xf32>
    %216 = arith.addf %215, %214 : vector<8x32xf32>
    %217 = arith.divf %215, %216 : vector<8x32xf32>
    %218 = arith.mulf %209, %161 : vector<8x32xf32>
    %219 = arith.mulf %203, %211 : vector<8x32xf32>
    %220 = arith.addf %218, %219 : vector<8x32xf32>
    %221 = math.tanh %220 : vector<8x32xf32>
    %222 = arith.mulf %217, %221 : vector<8x32xf32>
    %223 = tpu.concatenate %222, %192 in 1 : vector<8x32xf32>, vector<8x32xf32> -> vector<8x64xf32>
    %cst_57 = arith.constant dense<0.000000e+00> : vector<8x128xf32>
    %224 = tpu.matmul %223, %15, %cst_57 {dimension_numbers = #tpu.dot_dimension_numbers<[1], [0], [0], [1], [0, 0, 1, 1], [], []>} : vector<8x64xf32>, vector<64x128xf32>, vector<8x128xf32> -> vector<8x128xf32>
    %225 = vector.broadcast %16 : vector<1x128xf32> to vector<8x128xf32>
    %226 = arith.addf %224, %225 : vector<8x128xf32>
    %227 = vector.extract_strided_slice %226 {offsets = [0, 0], sizes = [8, 32], strides = [1, 1]} : vector<8x128xf32> to vector<8x32xf32>
    %228 = arith.negf %227 : vector<8x32xf32>
    %229 = math.exp %228 : vector<8x32xf32>
    %cst_58 = arith.constant 1.000000e+00 : f32
    %230 = vector.broadcast %cst_58 : f32 to vector<8x32xf32>
    %231 = arith.addf %230, %229 : vector<8x32xf32>
    %232 = arith.divf %230, %231 : vector<8x32xf32>
    %233 = vector.extract_strided_slice %226 {offsets = [0, 32], sizes = [8, 32], strides = [1, 1]} : vector<8x128xf32> to vector<8x32xf32>
    %234 = arith.negf %233 : vector<8x32xf32>
    %235 = math.exp %234 : vector<8x32xf32>
    %cst_59 = arith.constant 1.000000e+00 : f32
    %236 = vector.broadcast %cst_59 : f32 to vector<8x32xf32>
    %237 = arith.addf %236, %235 : vector<8x32xf32>
    %238 = arith.divf %236, %237 : vector<8x32xf32>
    %239 = vector.extract_strided_slice %226 {offsets = [0, 64], sizes = [8, 32], strides = [1, 1]} : vector<8x128xf32> to vector<8x32xf32>
    %240 = math.tanh %239 : vector<8x32xf32>
    %241 = vector.extract_strided_slice %226 {offsets = [0, 96], sizes = [8, 32], strides = [1, 1]} : vector<8x128xf32> to vector<8x32xf32>
    %242 = arith.negf %241 : vector<8x32xf32>
    %243 = math.exp %242 : vector<8x32xf32>
    %cst_60 = arith.constant 1.000000e+00 : f32
    %244 = vector.broadcast %cst_60 : f32 to vector<8x32xf32>
    %245 = arith.addf %244, %243 : vector<8x32xf32>
    %246 = arith.divf %244, %245 : vector<8x32xf32>
    %247 = arith.mulf %238, %190 : vector<8x32xf32>
    %248 = arith.mulf %232, %240 : vector<8x32xf32>
    %249 = arith.addf %247, %248 : vector<8x32xf32>
    %250 = math.tanh %249 : vector<8x32xf32>
    %251 = arith.mulf %246, %250 : vector<8x32xf32>
    %cst_61 = arith.constant dense<0.000000e+00> : vector<8x16xf32>
    %252 = tpu.matmul %251, %17, %cst_61 {dimension_numbers = #tpu.dot_dimension_numbers<[1], [0], [0], [1], [0, 0, 1, 1], [], []>} : vector<8x32xf32>, vector<32x16xf32>, vector<8x16xf32> -> vector<8x16xf32>
    %253 = vector.broadcast %18 : vector<1x16xf32> to vector<8x16xf32>
    %254 = arith.addf %252, %253 : vector<8x16xf32>
    %cst_62 = arith.constant dense<0.000000e+00> : vector<8x128xf32>
    %255 = tpu.matmul %222, %10, %cst_62 {dimension_numbers = #tpu.dot_dimension_numbers<[1], [0], [0], [1], [0, 0, 1, 1], [], []>} : vector<8x32xf32>, vector<32x128xf32>, vector<8x128xf32> -> vector<8x128xf32>
    %256 = arith.addf %14, %255 : vector<8x128xf32>
    %257 = vector.extract_strided_slice %256 {offsets = [0, 0], sizes = [8, 32], strides = [1, 1]} : vector<8x128xf32> to vector<8x32xf32>
    %258 = arith.negf %257 : vector<8x32xf32>
    %259 = math.exp %258 : vector<8x32xf32>
    %cst_63 = arith.constant 1.000000e+00 : f32
    %260 = vector.broadcast %cst_63 : f32 to vector<8x32xf32>
    %261 = arith.addf %260, %259 : vector<8x32xf32>
    %262 = arith.divf %260, %261 : vector<8x32xf32>
    %263 = vector.extract_strided_slice %256 {offsets = [0, 32], sizes = [8, 32], strides = [1, 1]} : vector<8x128xf32> to vector<8x32xf32>
    %264 = arith.negf %263 : vector<8x32xf32>
    %265 = math.exp %264 : vector<8x32xf32>
    %cst_64 = arith.constant 1.000000e+00 : f32
    %266 = vector.broadcast %cst_64 : f32 to vector<8x32xf32>
    %267 = arith.addf %266, %265 : vector<8x32xf32>
    %268 = arith.divf %266, %267 : vector<8x32xf32>
    %269 = vector.extract_strided_slice %256 {offsets = [0, 64], sizes = [8, 32], strides = [1, 1]} : vector<8x128xf32> to vector<8x32xf32>
    %270 = math.tanh %269 : vector<8x32xf32>
    %271 = vector.extract_strided_slice %256 {offsets = [0, 96], sizes = [8, 32], strides = [1, 1]} : vector<8x128xf32> to vector<8x32xf32>
    %272 = arith.negf %271 : vector<8x32xf32>
    %273 = math.exp %272 : vector<8x32xf32>
    %cst_65 = arith.constant 1.000000e+00 : f32
    %274 = vector.broadcast %cst_65 : f32 to vector<8x32xf32>
    %275 = arith.addf %274, %273 : vector<8x32xf32>
    %276 = arith.divf %274, %275 : vector<8x32xf32>
    %277 = arith.mulf %268, %220 : vector<8x32xf32>
    %278 = arith.mulf %262, %270 : vector<8x32xf32>
    %279 = arith.addf %277, %278 : vector<8x32xf32>
    %280 = math.tanh %279 : vector<8x32xf32>
    %281 = arith.mulf %276, %280 : vector<8x32xf32>
    %282 = tpu.concatenate %281, %251 in 1 : vector<8x32xf32>, vector<8x32xf32> -> vector<8x64xf32>
    %cst_66 = arith.constant dense<0.000000e+00> : vector<8x128xf32>
    %283 = tpu.matmul %282, %15, %cst_66 {dimension_numbers = #tpu.dot_dimension_numbers<[1], [0], [0], [1], [0, 0, 1, 1], [], []>} : vector<8x64xf32>, vector<64x128xf32>, vector<8x128xf32> -> vector<8x128xf32>
    %284 = vector.broadcast %16 : vector<1x128xf32> to vector<8x128xf32>
    %285 = arith.addf %283, %284 : vector<8x128xf32>
    %286 = vector.extract_strided_slice %285 {offsets = [0, 0], sizes = [8, 32], strides = [1, 1]} : vector<8x128xf32> to vector<8x32xf32>
    %287 = arith.negf %286 : vector<8x32xf32>
    %288 = math.exp %287 : vector<8x32xf32>
    %cst_67 = arith.constant 1.000000e+00 : f32
    %289 = vector.broadcast %cst_67 : f32 to vector<8x32xf32>
    %290 = arith.addf %289, %288 : vector<8x32xf32>
    %291 = arith.divf %289, %290 : vector<8x32xf32>
    %292 = vector.extract_strided_slice %285 {offsets = [0, 32], sizes = [8, 32], strides = [1, 1]} : vector<8x128xf32> to vector<8x32xf32>
    %293 = arith.negf %292 : vector<8x32xf32>
    %294 = math.exp %293 : vector<8x32xf32>
    %cst_68 = arith.constant 1.000000e+00 : f32
    %295 = vector.broadcast %cst_68 : f32 to vector<8x32xf32>
    %296 = arith.addf %295, %294 : vector<8x32xf32>
    %297 = arith.divf %295, %296 : vector<8x32xf32>
    %298 = vector.extract_strided_slice %285 {offsets = [0, 64], sizes = [8, 32], strides = [1, 1]} : vector<8x128xf32> to vector<8x32xf32>
    %299 = math.tanh %298 : vector<8x32xf32>
    %300 = vector.extract_strided_slice %285 {offsets = [0, 96], sizes = [8, 32], strides = [1, 1]} : vector<8x128xf32> to vector<8x32xf32>
    %301 = arith.negf %300 : vector<8x32xf32>
    %302 = math.exp %301 : vector<8x32xf32>
    %cst_69 = arith.constant 1.000000e+00 : f32
    %303 = vector.broadcast %cst_69 : f32 to vector<8x32xf32>
    %304 = arith.addf %303, %302 : vector<8x32xf32>
    %305 = arith.divf %303, %304 : vector<8x32xf32>
    %306 = arith.mulf %297, %249 : vector<8x32xf32>
    %307 = arith.mulf %291, %299 : vector<8x32xf32>
    %308 = arith.addf %306, %307 : vector<8x32xf32>
    %309 = math.tanh %308 : vector<8x32xf32>
    %310 = arith.mulf %305, %309 : vector<8x32xf32>
    %cst_70 = arith.constant dense<0.000000e+00> : vector<8x16xf32>
    %311 = tpu.matmul %310, %17, %cst_70 {dimension_numbers = #tpu.dot_dimension_numbers<[1], [0], [0], [1], [0, 0, 1, 1], [], []>} : vector<8x32xf32>, vector<32x16xf32>, vector<8x16xf32> -> vector<8x16xf32>
    %312 = vector.broadcast %18 : vector<1x16xf32> to vector<8x16xf32>
    %313 = arith.addf %311, %312 : vector<8x16xf32>
    %cst_71 = arith.constant dense<0.000000e+00> : vector<8x128xf32>
    %314 = tpu.matmul %281, %10, %cst_71 {dimension_numbers = #tpu.dot_dimension_numbers<[1], [0], [0], [1], [0, 0, 1, 1], [], []>} : vector<8x32xf32>, vector<32x128xf32>, vector<8x128xf32> -> vector<8x128xf32>
    %315 = arith.addf %14, %314 : vector<8x128xf32>
    %316 = vector.extract_strided_slice %315 {offsets = [0, 0], sizes = [8, 32], strides = [1, 1]} : vector<8x128xf32> to vector<8x32xf32>
    %317 = arith.negf %316 : vector<8x32xf32>
    %318 = math.exp %317 : vector<8x32xf32>
    %cst_72 = arith.constant 1.000000e+00 : f32
    %319 = vector.broadcast %cst_72 : f32 to vector<8x32xf32>
    %320 = arith.addf %319, %318 : vector<8x32xf32>
    %321 = arith.divf %319, %320 : vector<8x32xf32>
    %322 = vector.extract_strided_slice %315 {offsets = [0, 32], sizes = [8, 32], strides = [1, 1]} : vector<8x128xf32> to vector<8x32xf32>
    %323 = arith.negf %322 : vector<8x32xf32>
    %324 = math.exp %323 : vector<8x32xf32>
    %cst_73 = arith.constant 1.000000e+00 : f32
    %325 = vector.broadcast %cst_73 : f32 to vector<8x32xf32>
    %326 = arith.addf %325, %324 : vector<8x32xf32>
    %327 = arith.divf %325, %326 : vector<8x32xf32>
    %328 = vector.extract_strided_slice %315 {offsets = [0, 64], sizes = [8, 32], strides = [1, 1]} : vector<8x128xf32> to vector<8x32xf32>
    %329 = math.tanh %328 : vector<8x32xf32>
    %330 = vector.extract_strided_slice %315 {offsets = [0, 96], sizes = [8, 32], strides = [1, 1]} : vector<8x128xf32> to vector<8x32xf32>
    %331 = arith.negf %330 : vector<8x32xf32>
    %332 = math.exp %331 : vector<8x32xf32>
    %cst_74 = arith.constant 1.000000e+00 : f32
    %333 = vector.broadcast %cst_74 : f32 to vector<8x32xf32>
    %334 = arith.addf %333, %332 : vector<8x32xf32>
    %335 = arith.divf %333, %334 : vector<8x32xf32>
    %336 = arith.mulf %327, %279 : vector<8x32xf32>
    %337 = arith.mulf %321, %329 : vector<8x32xf32>
    %338 = arith.addf %336, %337 : vector<8x32xf32>
    %339 = math.tanh %338 : vector<8x32xf32>
    %340 = arith.mulf %335, %339 : vector<8x32xf32>
    %341 = tpu.concatenate %340, %310 in 1 : vector<8x32xf32>, vector<8x32xf32> -> vector<8x64xf32>
    %cst_75 = arith.constant dense<0.000000e+00> : vector<8x128xf32>
    %342 = tpu.matmul %341, %15, %cst_75 {dimension_numbers = #tpu.dot_dimension_numbers<[1], [0], [0], [1], [0, 0, 1, 1], [], []>} : vector<8x64xf32>, vector<64x128xf32>, vector<8x128xf32> -> vector<8x128xf32>
    %343 = vector.broadcast %16 : vector<1x128xf32> to vector<8x128xf32>
    %344 = arith.addf %342, %343 : vector<8x128xf32>
    %345 = vector.extract_strided_slice %344 {offsets = [0, 0], sizes = [8, 32], strides = [1, 1]} : vector<8x128xf32> to vector<8x32xf32>
    %346 = arith.negf %345 : vector<8x32xf32>
    %347 = math.exp %346 : vector<8x32xf32>
    %cst_76 = arith.constant 1.000000e+00 : f32
    %348 = vector.broadcast %cst_76 : f32 to vector<8x32xf32>
    %349 = arith.addf %348, %347 : vector<8x32xf32>
    %350 = arith.divf %348, %349 : vector<8x32xf32>
    %351 = vector.extract_strided_slice %344 {offsets = [0, 32], sizes = [8, 32], strides = [1, 1]} : vector<8x128xf32> to vector<8x32xf32>
    %352 = arith.negf %351 : vector<8x32xf32>
    %353 = math.exp %352 : vector<8x32xf32>
    %cst_77 = arith.constant 1.000000e+00 : f32
    %354 = vector.broadcast %cst_77 : f32 to vector<8x32xf32>
    %355 = arith.addf %354, %353 : vector<8x32xf32>
    %356 = arith.divf %354, %355 : vector<8x32xf32>
    %357 = vector.extract_strided_slice %344 {offsets = [0, 64], sizes = [8, 32], strides = [1, 1]} : vector<8x128xf32> to vector<8x32xf32>
    %358 = math.tanh %357 : vector<8x32xf32>
    %359 = vector.extract_strided_slice %344 {offsets = [0, 96], sizes = [8, 32], strides = [1, 1]} : vector<8x128xf32> to vector<8x32xf32>
    %360 = arith.negf %359 : vector<8x32xf32>
    %361 = math.exp %360 : vector<8x32xf32>
    %cst_78 = arith.constant 1.000000e+00 : f32
    %362 = vector.broadcast %cst_78 : f32 to vector<8x32xf32>
    %363 = arith.addf %362, %361 : vector<8x32xf32>
    %364 = arith.divf %362, %363 : vector<8x32xf32>
    %365 = arith.mulf %356, %308 : vector<8x32xf32>
    %366 = arith.mulf %350, %358 : vector<8x32xf32>
    %367 = arith.addf %365, %366 : vector<8x32xf32>
    %368 = math.tanh %367 : vector<8x32xf32>
    %369 = arith.mulf %364, %368 : vector<8x32xf32>
    %cst_79 = arith.constant dense<0.000000e+00> : vector<8x16xf32>
    %370 = tpu.matmul %369, %17, %cst_79 {dimension_numbers = #tpu.dot_dimension_numbers<[1], [0], [0], [1], [0, 0, 1, 1], [], []>} : vector<8x32xf32>, vector<32x16xf32>, vector<8x16xf32> -> vector<8x16xf32>
    %371 = vector.broadcast %18 : vector<1x16xf32> to vector<8x16xf32>
    %372 = arith.addf %370, %371 : vector<8x16xf32>
    %cst_80 = arith.constant dense<0.000000e+00> : vector<8x128xf32>
    %373 = tpu.matmul %340, %10, %cst_80 {dimension_numbers = #tpu.dot_dimension_numbers<[1], [0], [0], [1], [0, 0, 1, 1], [], []>} : vector<8x32xf32>, vector<32x128xf32>, vector<8x128xf32> -> vector<8x128xf32>
    %374 = arith.addf %14, %373 : vector<8x128xf32>
    %375 = vector.extract_strided_slice %374 {offsets = [0, 0], sizes = [8, 32], strides = [1, 1]} : vector<8x128xf32> to vector<8x32xf32>
    %376 = arith.negf %375 : vector<8x32xf32>
    %377 = math.exp %376 : vector<8x32xf32>
    %cst_81 = arith.constant 1.000000e+00 : f32
    %378 = vector.broadcast %cst_81 : f32 to vector<8x32xf32>
    %379 = arith.addf %378, %377 : vector<8x32xf32>
    %380 = arith.divf %378, %379 : vector<8x32xf32>
    %381 = vector.extract_strided_slice %374 {offsets = [0, 32], sizes = [8, 32], strides = [1, 1]} : vector<8x128xf32> to vector<8x32xf32>
    %382 = arith.negf %381 : vector<8x32xf32>
    %383 = math.exp %382 : vector<8x32xf32>
    %cst_82 = arith.constant 1.000000e+00 : f32
    %384 = vector.broadcast %cst_82 : f32 to vector<8x32xf32>
    %385 = arith.addf %384, %383 : vector<8x32xf32>
    %386 = arith.divf %384, %385 : vector<8x32xf32>
    %387 = vector.extract_strided_slice %374 {offsets = [0, 64], sizes = [8, 32], strides = [1, 1]} : vector<8x128xf32> to vector<8x32xf32>
    %388 = math.tanh %387 : vector<8x32xf32>
    %389 = vector.extract_strided_slice %374 {offsets = [0, 96], sizes = [8, 32], strides = [1, 1]} : vector<8x128xf32> to vector<8x32xf32>
    %390 = arith.negf %389 : vector<8x32xf32>
    %391 = math.exp %390 : vector<8x32xf32>
    %cst_83 = arith.constant 1.000000e+00 : f32
    %392 = vector.broadcast %cst_83 : f32 to vector<8x32xf32>
    %393 = arith.addf %392, %391 : vector<8x32xf32>
    %394 = arith.divf %392, %393 : vector<8x32xf32>
    %395 = arith.mulf %386, %338 : vector<8x32xf32>
    %396 = arith.mulf %380, %388 : vector<8x32xf32>
    %397 = arith.addf %395, %396 : vector<8x32xf32>
    %398 = math.tanh %397 : vector<8x32xf32>
    %399 = arith.mulf %394, %398 : vector<8x32xf32>
    %400 = tpu.concatenate %399, %369 in 1 : vector<8x32xf32>, vector<8x32xf32> -> vector<8x64xf32>
    %cst_84 = arith.constant dense<0.000000e+00> : vector<8x128xf32>
    %401 = tpu.matmul %400, %15, %cst_84 {dimension_numbers = #tpu.dot_dimension_numbers<[1], [0], [0], [1], [0, 0, 1, 1], [], []>} : vector<8x64xf32>, vector<64x128xf32>, vector<8x128xf32> -> vector<8x128xf32>
    %402 = vector.broadcast %16 : vector<1x128xf32> to vector<8x128xf32>
    %403 = arith.addf %401, %402 : vector<8x128xf32>
    %404 = vector.extract_strided_slice %403 {offsets = [0, 0], sizes = [8, 32], strides = [1, 1]} : vector<8x128xf32> to vector<8x32xf32>
    %405 = arith.negf %404 : vector<8x32xf32>
    %406 = math.exp %405 : vector<8x32xf32>
    %cst_85 = arith.constant 1.000000e+00 : f32
    %407 = vector.broadcast %cst_85 : f32 to vector<8x32xf32>
    %408 = arith.addf %407, %406 : vector<8x32xf32>
    %409 = arith.divf %407, %408 : vector<8x32xf32>
    %410 = vector.extract_strided_slice %403 {offsets = [0, 32], sizes = [8, 32], strides = [1, 1]} : vector<8x128xf32> to vector<8x32xf32>
    %411 = arith.negf %410 : vector<8x32xf32>
    %412 = math.exp %411 : vector<8x32xf32>
    %cst_86 = arith.constant 1.000000e+00 : f32
    %413 = vector.broadcast %cst_86 : f32 to vector<8x32xf32>
    %414 = arith.addf %413, %412 : vector<8x32xf32>
    %415 = arith.divf %413, %414 : vector<8x32xf32>
    %416 = vector.extract_strided_slice %403 {offsets = [0, 64], sizes = [8, 32], strides = [1, 1]} : vector<8x128xf32> to vector<8x32xf32>
    %417 = math.tanh %416 : vector<8x32xf32>
    %418 = vector.extract_strided_slice %403 {offsets = [0, 96], sizes = [8, 32], strides = [1, 1]} : vector<8x128xf32> to vector<8x32xf32>
    %419 = arith.negf %418 : vector<8x32xf32>
    %420 = math.exp %419 : vector<8x32xf32>
    %cst_87 = arith.constant 1.000000e+00 : f32
    %421 = vector.broadcast %cst_87 : f32 to vector<8x32xf32>
    %422 = arith.addf %421, %420 : vector<8x32xf32>
    %423 = arith.divf %421, %422 : vector<8x32xf32>
    %424 = arith.mulf %415, %367 : vector<8x32xf32>
    %425 = arith.mulf %409, %417 : vector<8x32xf32>
    %426 = arith.addf %424, %425 : vector<8x32xf32>
    %427 = math.tanh %426 : vector<8x32xf32>
    %428 = arith.mulf %423, %427 : vector<8x32xf32>
    %cst_88 = arith.constant dense<0.000000e+00> : vector<8x16xf32>
    %429 = tpu.matmul %428, %17, %cst_88 {dimension_numbers = #tpu.dot_dimension_numbers<[1], [0], [0], [1], [0, 0, 1, 1], [], []>} : vector<8x32xf32>, vector<32x16xf32>, vector<8x16xf32> -> vector<8x16xf32>
    %430 = vector.broadcast %18 : vector<1x16xf32> to vector<8x16xf32>
    %431 = arith.addf %429, %430 : vector<8x16xf32>
    %cst_89 = arith.constant dense<0.000000e+00> : vector<8x128xf32>
    %432 = tpu.matmul %399, %10, %cst_89 {dimension_numbers = #tpu.dot_dimension_numbers<[1], [0], [0], [1], [0, 0, 1, 1], [], []>} : vector<8x32xf32>, vector<32x128xf32>, vector<8x128xf32> -> vector<8x128xf32>
    %433 = arith.addf %14, %432 : vector<8x128xf32>
    %434 = vector.extract_strided_slice %433 {offsets = [0, 0], sizes = [8, 32], strides = [1, 1]} : vector<8x128xf32> to vector<8x32xf32>
    %435 = arith.negf %434 : vector<8x32xf32>
    %436 = math.exp %435 : vector<8x32xf32>
    %cst_90 = arith.constant 1.000000e+00 : f32
    %437 = vector.broadcast %cst_90 : f32 to vector<8x32xf32>
    %438 = arith.addf %437, %436 : vector<8x32xf32>
    %439 = arith.divf %437, %438 : vector<8x32xf32>
    %440 = vector.extract_strided_slice %433 {offsets = [0, 32], sizes = [8, 32], strides = [1, 1]} : vector<8x128xf32> to vector<8x32xf32>
    %441 = arith.negf %440 : vector<8x32xf32>
    %442 = math.exp %441 : vector<8x32xf32>
    %cst_91 = arith.constant 1.000000e+00 : f32
    %443 = vector.broadcast %cst_91 : f32 to vector<8x32xf32>
    %444 = arith.addf %443, %442 : vector<8x32xf32>
    %445 = arith.divf %443, %444 : vector<8x32xf32>
    %446 = vector.extract_strided_slice %433 {offsets = [0, 64], sizes = [8, 32], strides = [1, 1]} : vector<8x128xf32> to vector<8x32xf32>
    %447 = math.tanh %446 : vector<8x32xf32>
    %448 = vector.extract_strided_slice %433 {offsets = [0, 96], sizes = [8, 32], strides = [1, 1]} : vector<8x128xf32> to vector<8x32xf32>
    %449 = arith.negf %448 : vector<8x32xf32>
    %450 = math.exp %449 : vector<8x32xf32>
    %cst_92 = arith.constant 1.000000e+00 : f32
    %451 = vector.broadcast %cst_92 : f32 to vector<8x32xf32>
    %452 = arith.addf %451, %450 : vector<8x32xf32>
    %453 = arith.divf %451, %452 : vector<8x32xf32>
    %454 = arith.mulf %445, %397 : vector<8x32xf32>
    %455 = arith.mulf %439, %447 : vector<8x32xf32>
    %456 = arith.addf %454, %455 : vector<8x32xf32>
    %457 = math.tanh %456 : vector<8x32xf32>
    %458 = arith.mulf %453, %457 : vector<8x32xf32>
    %459 = tpu.concatenate %458, %428 in 1 : vector<8x32xf32>, vector<8x32xf32> -> vector<8x64xf32>
    %cst_93 = arith.constant dense<0.000000e+00> : vector<8x128xf32>
    %460 = tpu.matmul %459, %15, %cst_93 {dimension_numbers = #tpu.dot_dimension_numbers<[1], [0], [0], [1], [0, 0, 1, 1], [], []>} : vector<8x64xf32>, vector<64x128xf32>, vector<8x128xf32> -> vector<8x128xf32>
    %461 = vector.broadcast %16 : vector<1x128xf32> to vector<8x128xf32>
    %462 = arith.addf %460, %461 : vector<8x128xf32>
    %463 = vector.extract_strided_slice %462 {offsets = [0, 0], sizes = [8, 32], strides = [1, 1]} : vector<8x128xf32> to vector<8x32xf32>
    %464 = arith.negf %463 : vector<8x32xf32>
    %465 = math.exp %464 : vector<8x32xf32>
    %cst_94 = arith.constant 1.000000e+00 : f32
    %466 = vector.broadcast %cst_94 : f32 to vector<8x32xf32>
    %467 = arith.addf %466, %465 : vector<8x32xf32>
    %468 = arith.divf %466, %467 : vector<8x32xf32>
    %469 = vector.extract_strided_slice %462 {offsets = [0, 32], sizes = [8, 32], strides = [1, 1]} : vector<8x128xf32> to vector<8x32xf32>
    %470 = arith.negf %469 : vector<8x32xf32>
    %471 = math.exp %470 : vector<8x32xf32>
    %cst_95 = arith.constant 1.000000e+00 : f32
    %472 = vector.broadcast %cst_95 : f32 to vector<8x32xf32>
    %473 = arith.addf %472, %471 : vector<8x32xf32>
    %474 = arith.divf %472, %473 : vector<8x32xf32>
    %475 = vector.extract_strided_slice %462 {offsets = [0, 64], sizes = [8, 32], strides = [1, 1]} : vector<8x128xf32> to vector<8x32xf32>
    %476 = math.tanh %475 : vector<8x32xf32>
    %477 = vector.extract_strided_slice %462 {offsets = [0, 96], sizes = [8, 32], strides = [1, 1]} : vector<8x128xf32> to vector<8x32xf32>
    %478 = arith.negf %477 : vector<8x32xf32>
    %479 = math.exp %478 : vector<8x32xf32>
    %cst_96 = arith.constant 1.000000e+00 : f32
    %480 = vector.broadcast %cst_96 : f32 to vector<8x32xf32>
    %481 = arith.addf %480, %479 : vector<8x32xf32>
    %482 = arith.divf %480, %481 : vector<8x32xf32>
    %483 = arith.mulf %474, %426 : vector<8x32xf32>
    %484 = arith.mulf %468, %476 : vector<8x32xf32>
    %485 = arith.addf %483, %484 : vector<8x32xf32>
    %486 = math.tanh %485 : vector<8x32xf32>
    %487 = arith.mulf %482, %486 : vector<8x32xf32>
    %cst_97 = arith.constant dense<0.000000e+00> : vector<8x16xf32>
    %488 = tpu.matmul %487, %17, %cst_97 {dimension_numbers = #tpu.dot_dimension_numbers<[1], [0], [0], [1], [0, 0, 1, 1], [], []>} : vector<8x32xf32>, vector<32x16xf32>, vector<8x16xf32> -> vector<8x16xf32>
    %489 = vector.broadcast %18 : vector<1x16xf32> to vector<8x16xf32>
    %490 = arith.addf %488, %489 : vector<8x16xf32>
    %491 = tpu.concatenate %77, %136, %195, %254, %313, %372, %431, %490 in 1 : vector<8x16xf32>, vector<8x16xf32>, vector<8x16xf32>, vector<8x16xf32>, vector<8x16xf32>, vector<8x16xf32>, vector<8x16xf32>, vector<8x16xf32> -> vector<8x128xf32>
    %c0_98 = arith.constant 0 : index
    %c0_99 = arith.constant 0 : index
    %492 = vector.load %arg11[%c0_98, %c0_99] : memref<8x128xf32, #tpu.memory_space<vmem>>, vector<8x128xf32>
    tpu.vector_store %arg11[%c0_98, %c0_99], %491 {strides = array<i32>} : memref<8x128xf32, #tpu.memory_space<vmem>>, vector<8x128xf32>,
    %c0_100 = arith.constant 0 : index
    %c0_101 = arith.constant 0 : index
    %c0_102 = arith.constant 0 : index
    %493 = vector.load %arg12[%c0_100, %c0_101, %c0_102] : memref<2x8x32xf32, #tpu.memory_space<vmem>>, vector<1x8x32xf32>
    %494 = vector.shape_cast %493 : vector<1x8x32xf32> to vector<8x32xf32>
    %495 = vector.shape_cast %458 : vector<8x32xf32> to vector<1x8x32xf32>
    tpu.vector_store %arg12[%c0_100, %c0_101, %c0_102], %495 {strides = array<i32>} : memref<2x8x32xf32, #tpu.memory_space<vmem>>, vector<1x8x32xf32>,
    %c0_103 = arith.constant 0 : index
    %c0_104 = arith.constant 0 : index
    %c0_105 = arith.constant 0 : index
    %496 = vector.load %arg13[%c0_103, %c0_104, %c0_105] : memref<2x8x32xf32, #tpu.memory_space<vmem>>, vector<1x8x32xf32>
    %497 = vector.shape_cast %496 : vector<1x8x32xf32> to vector<8x32xf32>
    %498 = vector.shape_cast %456 : vector<8x32xf32> to vector<1x8x32xf32>
    tpu.vector_store %arg13[%c0_103, %c0_104, %c0_105], %498 {strides = array<i32>} : memref<2x8x32xf32, #tpu.memory_space<vmem>>, vector<1x8x32xf32>,
    %c1_106 = arith.constant 1 : index
    %c0_107 = arith.constant 0 : index
    %c0_108 = arith.constant 0 : index
    %499 = vector.load %arg12[%c1_106, %c0_107, %c0_108] : memref<2x8x32xf32, #tpu.memory_space<vmem>>, vector<1x8x32xf32>
    %500 = vector.shape_cast %499 : vector<1x8x32xf32> to vector<8x32xf32>
    %501 = vector.shape_cast %487 : vector<8x32xf32> to vector<1x8x32xf32>
    tpu.vector_store %arg12[%c1_106, %c0_107, %c0_108], %501 {strides = array<i32>} : memref<2x8x32xf32, #tpu.memory_space<vmem>>, vector<1x8x32xf32>,
    %c1_109 = arith.constant 1 : index
    %c0_110 = arith.constant 0 : index
    %c0_111 = arith.constant 0 : index
    %502 = vector.load %arg13[%c1_109, %c0_110, %c0_111] : memref<2x8x32xf32, #tpu.memory_space<vmem>>, vector<1x8x32xf32>
    %503 = vector.shape_cast %502 : vector<1x8x32xf32> to vector<8x32xf32>
    %504 = vector.shape_cast %485 : vector<8x32xf32> to vector<1x8x32xf32>
    tpu.vector_store %arg13[%c1_109, %c0_110, %c0_111], %504 {strides = array<i32>} : memref<2x8x32xf32, #tpu.memory_space<vmem>>, vector<1x8x32xf32>,
    return
  }
  func.func @transform_0(%arg0: i32) -> (i32, i32) {
    %c0_i32 = arith.constant 0 : i32
    %c0_i32_0 = arith.constant 0 : i32
    %c0_i32_1 = arith.constant 0 : i32
    return %c0_i32, %c0_i32_0 : i32, i32
  }
  func.func @transform_1(%arg0: i32) -> (i32, i32, i32) {
    %c0_i32 = arith.constant 0 : i32
    %c0_i32_0 = arith.constant 0 : i32
    %c0_i32_1 = arith.constant 0 : i32
    %c0_i32_2 = arith.constant 0 : i32
    return %c0_i32, %c0_i32_0, %c0_i32_1 : i32, i32, i32
  }
  func.func @transform_2(%arg0: i32) -> (i32, i32, i32) {
    %c0_i32 = arith.constant 0 : i32
    %c0_i32_0 = arith.constant 0 : i32
    %c0_i32_1 = arith.constant 0 : i32
    %c0_i32_2 = arith.constant 0 : i32
    return %c0_i32, %c0_i32_0, %c0_i32_1 : i32, i32, i32
  }
  func.func @transform_3(%arg0: i32) -> (i32, i32) {
    %c0_i32 = arith.constant 0 : i32
    %c0_i32_0 = arith.constant 0 : i32
    %c0_i32_1 = arith.constant 0 : i32
    return %c0_i32, %c0_i32_0 : i32, i32
  }
  func.func @transform_4(%arg0: i32) -> (i32, i32) {
    %c0_i32 = arith.constant 0 : i32
    %c0_i32_0 = arith.constant 0 : i32
    %c0_i32_1 = arith.constant 0 : i32
    return %c0_i32, %c0_i32_0 : i32, i32
  }
  func.func @transform_5(%arg0: i32) -> (i32, i32) {
    %c0_i32 = arith.constant 0 : i32
    %c0_i32_0 = arith.constant 0 : i32
    %c0_i32_1 = arith.constant 0 : i32
    return %c0_i32, %c0_i32_0 : i32, i32
  }
  func.func @transform_6(%arg0: i32) -> (i32, i32) {
    %c0_i32 = arith.constant 0 : i32
    %c0_i32_0 = arith.constant 0 : i32
    %c0_i32_1 = arith.constant 0 : i32
    return %c0_i32, %c0_i32_0 : i32, i32
  }
  func.func @transform_7(%arg0: i32) -> (i32, i32) {
    %c0_i32 = arith.constant 0 : i32
    %c0_i32_0 = arith.constant 0 : i32
    %c0_i32_1 = arith.constant 0 : i32
    return %c0_i32, %c0_i32_0 : i32, i32
  }
  func.func @transform_8(%arg0: i32) -> (i32, i32) {
    %c0_i32 = arith.constant 0 : i32
    %c0_i32_0 = arith.constant 0 : i32
    %c0_i32_1 = arith.constant 0 : i32
    return %c0_i32, %c0_i32_0 : i32, i32
  }
  func.func @transform_9(%arg0: i32) -> (i32, i32) {
    %c0_i32 = arith.constant 0 : i32
    %c0_i32_0 = arith.constant 0 : i32
    %c0_i32_1 = arith.constant 0 : i32
    return %c0_i32, %c0_i32_0 : i32, i32
  }
  func.func @transform_10(%arg0: i32) -> (i32, i32) {
    %c0_i32 = arith.constant 0 : i32
    %c0_i32_0 = arith.constant 0 : i32
    %c0_i32_1 = arith.constant 0 : i32
    return %c0_i32, %c0_i32_0 : i32, i32
  }
  func.func @transform_11(%arg0: i32) -> (i32, i32, i32) {
    %c0_i32 = arith.constant 0 : i32
    %c0_i32_0 = arith.constant 0 : i32
    %c0_i32_1 = arith.constant 0 : i32
    %c0_i32_2 = arith.constant 0 : i32
    return %c0_i32, %c0_i32_0, %c0_i32_1 : i32, i32, i32
  }
  func.func @transform_12(%arg0: i32) -> (i32, i32, i32) {
    %c0_i32 = arith.constant 0 : i32
    %c0_i32_0 = arith.constant 0 : i32
    %c0_i32_1 = arith.constant 0 : i32
    %c0_i32_2 = arith.constant 0 : i32
    return %c0_i32, %c0_i32_0, %c0_i32_1 : i32, i32, i32
  }
}

</mosaic_0001>

<bundles_post_ra>
// kernel: tpu_custom_call.1
= control target key start
LH: loop header
LB: loop body
LE: loop exit
PB: predicated region body
PF: predicated region fallthrough
CT: control target
= control target key end

     0   :  { %18 = vsyncpa [#allocation3], 0  ;;  %s4289_s0 = inlined_call_operand.hbm [shape: f32[8,16], index: 0, kind: input, shape index: {}]   ;;  %s4290_s1 = inlined_call_operand.hbm [shape: f32[2,8,32], index: 1, kind: input, shape index: {}]   ;;  %s4291_s2 = inlined_call_operand.hbm [shape: f32[2,8,32], index: 2, kind: input, shape index: {}]   ;;  %s4292_s3 = inlined_call_operand.hbm [shape: f32[16,128], index: 3, kind: input, shape index: {}]   ;;  %s4293_s4 = inlined_call_operand.hbm [shape: f32[32,128], index: 4, kind: input, shape index: {}]   ;;  %s4294_s5 = inlined_call_operand.vmem [shape: f32[1,128], index: 5, kind: input, shape index: {}]   ;;  %s4295_s6 = inlined_call_operand.vmem [shape: f32[64,128], index: 6, kind: input, shape index: {}]   ;;  %s4296_s7 = inlined_call_operand.vmem [shape: f32[1,128], index: 7, kind: input, shape index: {}]   ;;  %s4297_s8 = inlined_call_operand.vmem [shape: f32[32,16], index: 8, kind: input, shape index: {}]   ;;  %s4298_s9 = inlined_call_operand.vmem [shape: f32[1,16], index: 9, kind: input, shape index: {}]   ;;  %s4299_s10 = inlined_call_operand.hbm [shape: f32[8,128], index: 10, kind: output, shape index: {0}]   ;;  %s4300_s11 = inlined_call_operand.hbm [shape: f32[2,8,32], index: 11, kind: output, shape index: {1}]   ;;  %s4301_s12 = inlined_call_operand.hbm [shape: f32[2,8,32], index: 12, kind: output, shape index: {2}]  }
   0x1   :  { %19 = vsyncpa [#allocation6], 0 }
   0x2   :  { %20 = vsyncpa [#allocation9], 0 }
   0x3   :  { %21 = vsyncpa [#allocation4], 0 }
   0x4   :  { %22 = vsyncpa [#allocation13], 0  ;;  %s3621_s21 = smov [#allocation5]   ;;  %s3435_s25 = scalar_lea.hbm %s4290_s1, 256 }
   0x5   :  { %s38_s22 = sshll.u32 %s3621_s21, 4  ;;  %p3436_p0 = scmp.ne.s32.totalorder %s4290_s1, %s3435_s25  ;;  %s39_s22 = int_to_ptr.vmem [resolvable:$true] %s38_s22 }
   0x6   :  { %p3439_p1 = scmp.lt.u32.totalorder %s3435_s25, %s4290_s1 }
   0x8   :  { %p3441_p2 = pnand %p3439_p1, %p3436_p0 }
   0xa   :  { %3444 = shalt.err (!%p3441_p2)
}
   0xb   :  { %s3445_s30 = scalar_lea.vmem %s39_s22, 256  ;;  %p3450_p4 = scmp.lt.s32.totalorder %s39_s22, %s39_s22 }
   0xc   :  { %p3446_p3 = scmp.ne.s32.totalorder %s39_s22, %s3445_s30  ;;  %p3451_p5 = scmp.lt.s32.totalorder %s3445_s30, %s3445_s30 }
   0xe   :  { %p3452_p6 = por %p3451_p5, %p3450_p4 }
  0x10   :  { %p3453_p7 = pnand %p3452_p6, %p3446_p3 }
  0x12   :  { %3456 = shalt.err (!%p3453_p7)
}
  0x13   :  { %s3622_s13 = smov 128   ;;  %s3623_s14 = smov 8  }
  0x14   :  { %44 = dma.hbm_to_vmem [thread:$0]  %s4290_s1, 256, %s39_s22, [#allocation6], %s3622_s13, %s3622_s13, %s3623_s14  }
  0x15   :  { %s3624_s17 = smov [#allocation8]   ;;  %s3625_s19 = smov [#allocation2]  }
  0x16   :  { %s62_s18 = sshll.u32 %s3624_s17, 4  ;;  %s29_s20 = sshll.u32 %s3625_s19, 4  ;;  %s63_s18 = int_to_ptr.vmem [resolvable:$true] %s62_s18  ;;  %s30_s20 = int_to_ptr.vmem [resolvable:$true] %s29_s20 }
  0x17   :  { %s3457_s24 = scalar_lea.hbm %s4292_s3, 256 }
  0x18   :  { %p3458_p8 = scmp.ne.s32.totalorder %s4292_s3, %s3457_s24  ;;  %p3461_p9 = scmp.lt.u32.totalorder %s3457_s24, %s4292_s3 }
  0x1a   :  { %p3463_p10 = pnand %p3461_p9, %p3458_p8 }
  0x1c   :  { %3466 = shalt.err (!%p3463_p10)
}
  0x1d   :  { %s3467_s1 = scalar_lea.vmem %s63_s18, 256  ;;  %p3472_p12 = scmp.lt.s32.totalorder %s63_s18, %s63_s18 }
  0x1e   :  { %p3468_p11 = scmp.ne.s32.totalorder %s63_s18, %s3467_s1  ;;  %p3473_p13 = scmp.lt.s32.totalorder %s3467_s1, %s3467_s1 }
  0x20   :  { %p3474_p0 = por %p3473_p13, %p3472_p12 }
  0x22   :  { %p3475_p1 = pnand %p3474_p0, %p3468_p11 }
  0x24   :  { %3478 = shalt.err (!%p3475_p1)
}
  0x25   :  { %68 = dma.hbm_to_vmem [thread:$0]  %s4292_s3, 256, %s63_s18, [#allocation9], %s3622_s13, %s3622_s13, %s3623_s14  }
  0x26   :  { %s3479_s16 = scalar_lea.hbm %s4289_s0, 128 }
  0x27   :  { %p3480_p2 = scmp.ne.s32.totalorder %s4289_s0, %s3479_s16  ;;  %p3483_p3 = scmp.lt.u32.totalorder %s3479_s16, %s4289_s0 }
  0x29   :  { %p3485_p4 = pnand %p3483_p3, %p3480_p2 }
  0x2b   :  { %3488 = shalt.err (!%p3485_p4)
}
  0x2c   :  { %s3489_s24 = scalar_lea.vmem %s30_s20, 128  ;;  %p3494_p6 = scmp.lt.s32.totalorder %s30_s20, %s30_s20 }
  0x2d   :  { %p3490_p5 = scmp.ne.s32.totalorder %s30_s20, %s3489_s24  ;;  %p3495_p7 = scmp.lt.s32.totalorder %s3489_s24, %s3489_s24 }
  0x2f   :  { %p3496_p8 = por %p3495_p7, %p3494_p6 }
  0x31   :  { %p3497_p9 = pnand %p3496_p8, %p3490_p5 }
  0x33   :  { %3500 = shalt.err (!%p3497_p9)
}
  0x34   :  { %32 = dma.hbm_to_vmem [thread:$0]  %s4289_s0, 128, %s30_s20, [#allocation3]  }
  0x35   :  { %s3626_s25 = smov [#allocation7]   ;;  %s3627_s27 = smov [#allocation10]  }
  0x36   :  { %s50_s26 = sshll.u32 %s3626_s25, 4  ;;  %s74_s28 = sshll.u32 %s3627_s27, 4  ;;  %s51_s26 = int_to_ptr.vmem [resolvable:$true] %s50_s26  ;;  %s75_s28 = int_to_ptr.vmem [resolvable:$true] %s74_s28 }
  0x37   :  { %s3501_s29 = scalar_lea.hbm %s4291_s2, 256 }
  0x38   :  { %p3502_p10 = scmp.ne.s32.totalorder %s4291_s2, %s3501_s29  ;;  %p3505_p11 = scmp.lt.u32.totalorder %s3501_s29, %s4291_s2 }
  0x3a   :  { %p3507_p12 = pnand %p3505_p11, %p3502_p10 }
  0x3c   :  { %3510 = shalt.err (!%p3507_p12)
}
  0x3d   :  { %s3511_s0 = scalar_lea.vmem %s51_s26, 256  ;;  %p3516_p0 = scmp.lt.s32.totalorder %s51_s26, %s51_s26 }
  0x3e   :  { %p3512_p13 = scmp.ne.s32.totalorder %s51_s26, %s3511_s0  ;;  %p3517_p1 = scmp.lt.s32.totalorder %s3511_s0, %s3511_s0 }
  0x40   :  { %p3518_p2 = por %p3517_p1, %p3516_p0 }
  0x42   :  { %p3519_p3 = pnand %p3518_p2, %p3512_p13 }
  0x44   :  { %3522 = shalt.err (!%p3519_p3)
}
  0x45   :  { %56 = dma.hbm_to_vmem [thread:$0]  %s4291_s2, 256, %s51_s26, [#allocation6], %s3622_s13, %s3622_s13, %s3623_s14  }
  0x46   :  { %s3523_s24 = scalar_lea.hbm %s4293_s4, 512 }
  0x47   :  { %p3524_p4 = scmp.ne.s32.totalorder %s4293_s4, %s3523_s24  ;;  %p3527_p5 = scmp.lt.u32.totalorder %s3523_s24, %s4293_s4 }
  0x49   :  { %p3529_p6 = pnand %p3527_p5, %p3524_p4 }
  0x4b   :  { %3532 = shalt.err (!%p3529_p6)
}
  0x4c   :  { %s3533_s1 = scalar_lea.vmem %s75_s28, 512  ;;  %p3538_p8 = scmp.lt.s32.totalorder %s75_s28, %s75_s28 }
  0x4d   :  { %p3534_p7 = scmp.ne.s32.totalorder %s75_s28, %s3533_s1  ;;  %p3539_p9 = scmp.lt.s32.totalorder %s3533_s1, %s3533_s1 }
  0x4f   :  { %p3540_p10 = por %p3539_p9, %p3538_p8 }
  0x51   :  { %p3541_p11 = pnand %p3540_p10, %p3534_p7 }
  0x53   :  { %3544 = shalt.err (!%p3541_p11)
}
  0x54   :  { %80 = dma.hbm_to_vmem [thread:$0]  %s4293_s4, 512, %s75_s28, [#allocation9], %s3622_s13, %s3622_s13, %s3623_s14  }
  0x55   :  { %3611 = dma.done.wait [#allocation3], 128  }
  0x56   :  { %3612 = vsyncadd [#allocation3], 4294967168 }
  0x57   :  { %3613 = dma.done.wait [#allocation6], 512  }
  0x58   :  { %3614 = vsyncadd [#allocation6], 4294966784 }
  0x59   :  { %3615 = dma.done.wait [#allocation9], 768  }
  0x5a   :  { %3616 = vsyncadd [#allocation9], 4294966528  ;;  %v3628_v0 = vmov 0.0|0.0   ;;  %vm3629_vm0 = vmmov 0   ;;  %v3630_v1 = vmov 0.0   ;;  %v115_v2 = vld [vmem:[#allocation10] sm:$0xff] }
  0x5b   :  { %3094 = vmatprep.subr.bf16.mxu1 %v3628_v0  ;;  %3091 = vmatprep.subr.bf16.mxu0 %v3628_v0  ;;  %v116_v3 = vld [vmem:[#allocation10 + $0x8] sm:$0xff]  ;;  %v113_v4 = vld [vmem:[#allocation8] sm:$0xff]  ;;  %v114_v6 = vld [vmem:[#allocation8 + $0x8] sm:$0xff]  ;;  %vm126_vm1 = vcmask 130048   ;;  %vm214_vm2 = vcmask 261120   ;;  %s3631_s22 = smov 64  }
  0x5c   :  { %2760 = vmatprep.mubr.msk.f32.mxu0 %vm3629_vm0, %v3630_v1  ;;  %2771 = vmatprep.mubr.msk.f32.mxu1 %vm3629_vm0, %v3630_v1  ;;  %v3784_v5 = vpack.c.bf16 %v116_v3, %v115_v2  ;;  %v117_v7 = vld [vmem:[#allocation10 + $0x10] sm:$0xff]  ;;  %v3092_v8 = vpack.c.bf16 %v114_v6, %v113_v4  ;;  %v118_v9 = vld [vmem:[#allocation10 + $0x18] sm:$0xff]  ;;  %v106_v11 = vld [vmem:[#allocation2] sm:$0xff]  ;;  %s3632_s29 = smov 32   ;;  %vm332_vm3 = vcmask 523264   ;;  %s3633_s19 = smov 16  }
  0x5d   :  { %v3787_v10 = vpack.c.bf16 %v118_v9, %v117_v7  ;;  %v107_v12 = vld [vmem:[#allocation5] sm:$0xff]  ;;  %v2557_v13 = vld [vmem:[%s4294_s5] ss:$0 sm:$0xff]  ;;  %v110_v21 = vld [vmem:[#allocation7] sm:$0xff]  ;;  %s3634_s21 = smov 48   ;;  %s3635_s23 = smov 80  }
  0x5e   :  { %3096 = vmatpush3.bf16.msra.mxu1 %v3784_v5  ;;  %3093 = vmatpush3.bf16.msra.mxu0 %v3092_v8  ;;  %v200_v32 = vld [vmem:[%s4295_s6] sm:$0xff]  ;;  %v201_v33 = vld [vmem:[%s4295_s6 + $0x8] sm:$0xff]  ;;  %v202_v34 = vld [vmem:[%s4295_s6 + $0x10] sm:$0xff]  ;;  %vm2484_vm4 = vcmask 392192   ;;  %vm2487_vm5 = vcmask 654336   ;;  %vm2489_vm6 = vcmask 785408  }
  0x5f   :  { %3097 = vmatprep.subr.bf16.mxu1 %v3628_v0  ;;  %3100 = vmatprep.subr.bf16.mxu0 %v3628_v0  ;;  %v3820_v35 = vpack.c.bf16 %v201_v33, %v200_v32  ;;  %v203_v36 = vld [vmem:[%s4295_s6 + $0x18] sm:$0xff]  ;;  %v204_v38 = vld [vmem:[%s4295_s6 + $0x20] sm:$0xff]  ;;  %v205_v39 = vld [vmem:[%s4295_s6 + $0x28] sm:$0xff] }
  0x60   :  { %v3826_v37 = vpack.c.bf16 %v203_v36, %v202_v34  ;;  %v3836_v40 = vpack.c.bf16 %v205_v39, %v204_v38  ;;  %v206_v41 = vld [vmem:[%s4295_s6 + $0x30] sm:$0xff]  ;;  %v207_v42 = vld [vmem:[%s4295_s6 + $0x38] sm:$0xff]  ;;  %v112_v46 = vld [vmem:[#allocation7 + $0x8] sm:$0xff] }
  0x61   :  { %2761 = vmatmul.mubr.msk.f32.vlgmr.msra.gmra.mrb[0].mxu0 %vm126_vm1, %v106_v11  ;;  %v3847_v44 = vpack.c.bf16 %v207_v42, %v206_v41  ;;  %v109_v45 = vld [vmem:[#allocation5 + $0x8] sm:$0xff]  ;;  %v3870_v52 = vld [vmem:[%s4296_s7] ss:$0 sm:$0xff]  ;;  %v210_v7 = vld [vmem:[%s4297_s8 + $0x8] sm:$0xff] }
  0x62   :  { %3099 = vmatpush3.bf16.msra.mxu1 %v3787_v10  ;;  %2790 = vmatprep.mubr.msk.f32.mxu0 %vm3629_vm0, %v3630_v1  ;;  %v209_v6 = vld [vmem:[%s4297_s8] sm:$0xff]  ;;  %v211_v8 = vld [vmem:[%s4297_s8 + $0x10] sm:$0xff]  ;;  %v212_v11 = vld [vmem:[%s4297_s8 + $0x18] sm:$0xff] }
  0x63   :  { %3112 = vmatprep.subr.bf16.mxu1 %v3628_v0  ;;  %3102 = vmatpush3.bf16.msra.mxu0 %v3820_v35  ;;  %v3887_v9 = vpack.c.bf16 %v210_v7, %v209_v6 }
  0x64   :  { %3103 = vmatprep.subr.bf16.mxu0 %v3628_v0 }
  0x65   :  { %2772 = vmatmul.mubr.msk.f32.vlgmr.msra.gmra.mrb[0].mxu1 %vm214_vm2, %v107_v12  ;;  %v3893_v12 = vpack.c.bf16 %v212_v11, %v211_v8 }
  0x66   :  { %2801 = vmatprep.mubr.msk.f32.mxu1 %vm3629_vm0, %v3630_v1  ;;  %3114 = vmatpush3.bf16.msra.mxu1 %v3887_v9 }
  0x67   :  { %3105 = vmatpush3.bf16.msra.mxu0 %v3826_v37  ;;  %3115 = vmatprep.subr.bf16.mxu1 %v3628_v0 }
  0x68   :  { %3106 = vmatprep.subr.bf16.mxu0 %v3628_v0 }
  0x6a   :  { %3117 = vmatpush3.bf16.msra.mxu1 %v3893_v12 }
  0x6b   :  { %3108 = vmatpush3.bf16.msra.mxu0 %v3836_v40  ;;  %3118 = vmatprep.subr.bf16.mxu1 %v3628_v0 }
  0x6c   :  { %3109 = vmatprep.subr.bf16.mxu0 %v3628_v0 }
  0x6f   :  { %3111 = vmatpush3.bf16.msra.mxu0 %v3847_v44 }
  0x70   :  { %3124 = vmatprep.subr.bf16.mxu0 %v3628_v0 }
 0x134   :  { %v196_v14 = vpop.f32.mrb[0].mxu0 }
 0x135   :  { %v3802_v15 = vadd.f32 %v2557_v13, %v196_v14  ;;  %v2762_v16 = vpop.f32.mrb[1].mxu0 }
 0x138   :  { %v284_v17 = vpop.f32.mrb[0].mxu1 }
 0x139   :  { %v288_v18 = vadd.f32 %v284_v17, %v3802_v15  ;;  %v2773_v19 = vpop.f32.mrb[1].mxu1 }
 0x13b   :  { %3306 = vtanh.f32 %v288_v18  ;;  %v2560_v22 = vmul.f32 -1.442695, %v288_v18 }
 0x13d   :  { %3308 = vpow2.f32 %v2560_v22 }
 0x145   :  { %v3307_v20 = vpop.eup %3306 }
 0x146   :  { %302 = vrot.lane.b32.xlu0 %v3307_v20, %s3631_s22 }
 0x147   :  { %v3309_v23 = vpop.eup %3308 }
 0x148   :  { %v292_v24 = vadd.f32 1.0, %v3309_v23 }
 0x14a   :  { %297 = vrot.lane.b32.xlu0 %v110_v21, %s3632_s29  ;;  %3310 = vrcp.f32 %v292_v24 }
 0x154   :  { %v3311_v25 = vpop.eup %3310 }
 0x1b8   :  { %v303_v26 = vpop.permute.xlu0 %302 }
 0x1b9   :  { %v305_v27 = vmul.f32 %v3311_v25, %v303_v26 }
 0x1bb   :  { %307 = vrot.lane.b32.xlu1 %v305_v27, %s3632_s29 }
 0x1bc   :  { %v298_v28 = vpop.permute.xlu0 %297 }
 0x1bd   :  { %v300_v29 = vmul.f32 %v3311_v25, %v298_v28 }
 0x22d   :  { %v308_v30 = vpop.permute.xlu1 %307 }
 0x22e   :  { %v3808_v31 = vadd.f32 %v308_v30, %v300_v29 }
 0x230   :  { %3312 = vtanh.f32 %v3808_v31 }
 0x23a   :  { %v3313_v43 = vpop.eup %3312 }
 0x23b   :  { %313 = vrot.lane.b32.xlu1 %v3313_v43, %s3631_s22 }
 0x23f   :  { %322 = vrot.lane.b32.xlu1 %v109_v45, %s3632_s29 }
 0x243   :  { %414 = vrot.lane.b32.xlu1 %v112_v46, %s3632_s29 }
 0x2ad   :  { %v314_v47 = vpop.permute.xlu1 %313 }
 0x2ae   :  { %v316_v48 = vmul.f32 %v3311_v25, %v314_v47 }
 0x2b0   :  { %318 = vrot.lane.b32.xlu0 %v316_v48, %s3632_s29 }
 0x2b1   :  { %v323_v49 = vpop.permute.xlu1 %322 }
 0x2b5   :  { %v415_v63 = vpop.permute.xlu1 %414 }
 0x322   :  { %v319_v50 = vpop.permute.xlu0 %318 }
 0x323   :  { %v325_v51 = vsel %vm214_vm2, %v319_v50, %v323_v49 }
 0x324   :  { %2791 = vmatmul.mubr.msk.f32.vlgmr.msra.gmra.mrb[2].mxu0 %vm332_vm3, %v325_v51 }
 0x325   :  { %3126 = vmatpush3.bf16.msra.mxu0 %v3820_v35  ;;  %2831 = vmatprep.mubr.msk.f32.mxu0 %vm3629_vm0, %v3630_v1 }
 0x326   :  { %3127 = vmatprep.subr.bf16.mxu0 %v3628_v0 }
 0x329   :  { %3129 = vmatpush3.bf16.msra.mxu0 %v3826_v37 }
 0x32a   :  { %3130 = vmatprep.subr.bf16.mxu0 %v3628_v0 }
 0x32d   :  { %3132 = vmatpush3.bf16.msra.mxu0 %v3836_v40 }
 0x32e   :  { %3133 = vmatprep.subr.bf16.mxu0 %v3628_v0 }
 0x331   :  { %3135 = vmatpush3.bf16.msra.mxu0 %v3847_v44 }
 0x332   :  { %3148 = vmatprep.subr.bf16.mxu0 %v3628_v0 }
 0x3f7   :  { %v402_v53 = vpop.f32.mrb[2].mxu0 }
 0x3f8   :  { %v403_v54 = vadd.f32 %v3870_v52, %v402_v53  ;;  %v2792_v55 = vpop.f32.mrb[3].mxu0 }
 0x3fa   :  { %3314 = vtanh.f32 %v403_v54  ;;  %v2563_v57 = vmul.f32 -1.442695, %v403_v54 }
 0x3fc   :  { %3316 = vpow2.f32 %v2563_v57 }
 0x404   :  { %v3315_v56 = vpop.eup %3314 }
 0x405   :  { %419 = vrot.lane.b32.xlu0 %v3315_v56, %s3631_s22 }
 0x406   :  { %v3317_v58 = vpop.eup %3316 }
 0x407   :  { %v409_v59 = vadd.f32 1.0, %v3317_v58 }
 0x409   :  { %3318 = vrcp.f32 %v409_v59 }
 0x413   :  { %v3319_v60 = vpop.eup %3318 }
 0x414   :  { %v417_v2 = vmul.f32 %v3319_v60, %v415_v63 }
 0x477   :  { %v420_v61 = vpop.permute.xlu0 %419 }
 0x478   :  { %v422_v62 = vmul.f32 %v3319_v60, %v420_v61 }
 0x47a   :  { %424 = vrot.lane.b32.xlu0 %v422_v62, %s3632_s29 }
 0x4ec   :  { %v425_v3 = vpop.permute.xlu0 %424 }
 0x4ed   :  { %v3875_v4 = vadd.f32 %v425_v3, %v417_v2 }
 0x4ef   :  { %3320 = vtanh.f32 %v3875_v4 }
 0x4f9   :  { %v3321_v13 = vpop.eup %3320 }
 0x4fa   :  { %430 = vrot.lane.b32.xlu1 %v3321_v13, %s3631_s22 }
 0x56c   :  { %v431_v14 = vpop.permute.xlu1 %430 }
 0x56d   :  { %v433_v16 = vmul.f32 %v3319_v60, %v431_v14 }
 0x56f   :  { %441 = vrot.lane.b32.xlu0 %v433_v16, %s3632_s29 }
 0x5e1   :  { %v442_v17 = vpop.permute.xlu0 %441 }
 0x5e2   :  { %2802 = vmatmul.mubr.msk.f32.vlgmr.msra.gmra.mrb[2].mxu1 %vm214_vm2, %v442_v17 }
 0x5e3   :  { %3120 = vmatpush3.bf16.msra.mxu1 %v3784_v5  ;;  %2812 = vmatprep.mubr.msk.f32.mxu1 %vm3629_vm0, %v3630_v1 }
 0x5e4   :  { %3121 = vmatprep.subr.bf16.mxu1 %v3628_v0 }
 0x5e7   :  { %3123 = vmatpush3.bf16.msra.mxu1 %v3787_v10 }
 0x5e8   :  { %3136 = vmatprep.subr.bf16.mxu1 %v3628_v0 }
 0x5ea   :  { %2813 = vmatmul.mubr.msk.f32.vlgmr.msra.gmra.mrb[4].mxu1 %vm214_vm2, %v319_v50 }
 0x5eb   :  { %3138 = vmatpush3.bf16.msra.mxu1 %v3887_v9  ;;  %2842 = vmatprep.mubr.msk.f32.mxu1 %vm3629_vm0, %v3630_v1 }
 0x5ec   :  { %3139 = vmatprep.subr.bf16.mxu1 %v3628_v0 }
 0x5ef   :  { %3141 = vmatpush3.bf16.msra.mxu1 %v3893_v12 }
 0x5f0   :  { %3142 = vmatprep.subr.bf16.mxu1 %v3628_v0 }
 0x6b5   :  { %v3914_v18 = vpop.f32.mrb[2].mxu1 }
 0x6b6   :  { %v2803_v19 = vpop.f32.mrb[3].mxu1 }
 0x6bd   :  { %v583_v20 = vpop.f32.mrb[4].mxu1 }
 0x6be   :  { %v587_v21 = vadd.f32 %v583_v20, %v3802_v15  ;;  %v2814_v22 = vpop.f32.mrb[5].mxu1 }
 0x6c0   :  { %3322 = vtanh.f32 %v587_v21  ;;  %v2567_v24 = vmul.f32 -1.442695, %v587_v21 }
 0x6c2   :  { %3324 = vpow2.f32 %v2567_v24 }
 0x6ca   :  { %v3323_v23 = vpop.eup %3322 }
 0x6cb   :  { %597 = vrot.lane.b32.xlu1 %v3323_v23, %s3631_s22 }
 0x6cc   :  { %v3325_v25 = vpop.eup %3324 }
 0x6cd   :  { %v591_v26 = vadd.f32 1.0, %v3325_v25 }
 0x6cf   :  { %3326 = vrcp.f32 %v591_v26 }
 0x6d9   :  { %v3327_v27 = vpop.eup %3326 }
 0x6da   :  { %v595_v30 = vmul.f32 %v3327_v27, %v3808_v31 }
 0x73d   :  { %v598_v28 = vpop.permute.xlu1 %597 }
 0x73e   :  { %v600_v29 = vmul.f32 %v3327_v27, %v598_v28 }
 0x740   :  { %602 = vrot.lane.b32.xlu0 %v600_v29, %s3632_s29 }
 0x7b2   :  { %v603_v32 = vpop.permute.xlu0 %602 }
 0x7b3   :  { %v3920_v33 = vadd.f32 %v603_v32, %v595_v30 }
 0x7b5   :  { %3328 = vtanh.f32 %v3920_v33 }
 0x7bf   :  { %v3329_v34 = vpop.eup %3328 }
 0x7c0   :  { %608 = vrot.lane.b32.xlu1 %v3329_v34, %s3631_s22 }
 0x7c4   :  { %616 = vrot.lane.b32.xlu1 %v433_v16, %s3631_s22 }
 0x832   :  { %v609_v36 = vpop.permute.xlu1 %608 }
 0x833   :  { %v611_v38 = vmul.f32 %v3327_v27, %v609_v36 }
 0x835   :  { %613 = vrot.lane.b32.xlu0 %v611_v38, %s3632_s29 }
 0x836   :  { %v617_v39 = vpop.permute.xlu1 %616 }
 0x8a7   :  { %v614_v41 = vpop.permute.xlu0 %613 }
 0x8a8   :  { %v619_v42 = vsel %vm214_vm2, %v614_v41, %v617_v39 }
 0x8a9   :  { %2832 = vmatmul.mubr.msk.f32.vlgmr.msra.gmra.mrb[4].mxu0 %vm332_vm3, %v619_v42 }
 0x8aa   :  { %3150 = vmatpush3.bf16.msra.mxu0 %v3820_v35  ;;  %2872 = vmatprep.mubr.msk.f32.mxu0 %vm3629_vm0, %v3630_v1 }
 0x8ab   :  { %3151 = vmatprep.subr.bf16.mxu0 %v3628_v0 }
 0x8ae   :  { %3153 = vmatpush3.bf16.msra.mxu0 %v3826_v37 }
 0x8af   :  { %3154 = vmatprep.subr.bf16.mxu0 %v3628_v0 }
 0x8b2   :  { %3156 = vmatpush3.bf16.msra.mxu0 %v3836_v40 }
 0x8b3   :  { %3157 = vmatprep.subr.bf16.mxu0 %v3628_v0 }
 0x8b6   :  { %3159 = vmatpush3.bf16.msra.mxu0 %v3847_v44 }
 0x8b7   :  { %3172 = vmatprep.subr.bf16.mxu0 %v3628_v0 }
 0x97c   :  { %v689_v31 = vpop.f32.mrb[4].mxu0 }
 0x97d   :  { %v690_v43 = vadd.f32 %v3870_v52, %v689_v31  ;;  %v2833_v45 = vpop.f32.mrb[5].mxu0 }
 0x97f   :  { %3330 = vtanh.f32 %v690_v43  ;;  %v2569_v47 = vmul.f32 -1.442695, %v690_v43 }
 0x981   :  { %3332 = vpow2.f32 %v2569_v47 }
 0x989   :  { %v3331_v46 = vpop.eup %3330 }
 0x98a   :  { %702 = vrot.lane.b32.xlu0 %v3331_v46, %s3631_s22 }
 0x98b   :  { %v3333_v48 = vpop.eup %3332 }
 0x98c   :  { %v696_v49 = vadd.f32 1.0, %v3333_v48 }
 0x98e   :  { %3334 = vrcp.f32 %v696_v49 }
 0x998   :  { %v3335_v50 = vpop.eup %3334 }
 0x999   :  { %v700_v54 = vmul.f32 %v3335_v50, %v3875_v4 }
 0x9fc   :  { %v703_v51 = vpop.permute.xlu0 %702 }
 0x9fd   :  { %v705_v53 = vmul.f32 %v3335_v50, %v703_v51 }
 0x9ff   :  { %707 = vrot.lane.b32.xlu1 %v705_v53, %s3632_s29 }
 0xa71   :  { %v708_v55 = vpop.permute.xlu1 %707 }
 0xa72   :  { %v3942_v56 = vadd.f32 %v708_v55, %v700_v54 }
 0xa74   :  { %3336 = vtanh.f32 %v3942_v56 }
 0xa7e   :  { %v3337_v57 = vpop.eup %3336 }
 0xa7f   :  { %713 = vrot.lane.b32.xlu0 %v3337_v57, %s3631_s22 }
 0xaf1   :  { %v714_v58 = vpop.permute.xlu0 %713 }
 0xaf2   :  { %v716_v59 = vmul.f32 %v3335_v50, %v714_v58 }
 0xaf4   :  { %718 = vrot.lane.b32.xlu1 %v716_v59, %s3632_s29 }
 0xb66   :  { %v719_v60 = vpop.permute.xlu1 %718 }
 0xb67   :  { %2843 = vmatmul.mubr.msk.f32.vlgmr.msra.gmra.mrb[6].mxu1 %vm214_vm2, %v719_v60 }
 0xb68   :  { %3144 = vmatpush3.bf16.msra.mxu1 %v3784_v5  ;;  %2853 = vmatprep.mubr.msk.f32.mxu1 %vm3629_vm0, %v3630_v1 }
 0xb69   :  { %3145 = vmatprep.subr.bf16.mxu1 %v3628_v0 }
 0xb6c   :  { %3147 = vmatpush3.bf16.msra.mxu1 %v3787_v10 }
 0xb6d   :  { %3160 = vmatprep.subr.bf16.mxu1 %v3628_v0 }
 0xb6f   :  { %2854 = vmatmul.mubr.msk.f32.vlgmr.msra.gmra.mrb[8].mxu1 %vm214_vm2, %v614_v41 }
 0xb70   :  { %3162 = vmatpush3.bf16.msra.mxu1 %v3887_v9  ;;  %2883 = vmatprep.mubr.msk.f32.mxu1 %vm3629_vm0, %v3630_v1 }
 0xb71   :  { %3163 = vmatprep.subr.bf16.mxu1 %v3628_v0 }
 0xb74   :  { %3165 = vmatpush3.bf16.msra.mxu1 %v3893_v12 }
 0xb75   :  { %3166 = vmatprep.subr.bf16.mxu1 %v3628_v0 }
 0xc3a   :  { %v3961_v61 = vpop.f32.mrb[6].mxu1 }
 0xc3b   :  { %v2844_v62 = vpop.f32.mrb[7].mxu1 }
 0xc42   :  { %v860_v63 = vpop.f32.mrb[8].mxu1 }
 0xc43   :  { %v864_v2 = vadd.f32 %v860_v63, %v3802_v15  ;;  %v2855_v3 = vpop.f32.mrb[9].mxu1 }
 0xc45   :  { %3338 = vtanh.f32 %v864_v2  ;;  %v2572_v6 = vmul.f32 -1.442695, %v864_v2 }
 0xc47   :  { %3340 = vpow2.f32 %v2572_v6 }
 0xc4f   :  { %v3339_v4 = vpop.eup %3338 }
 0xc50   :  { %874 = vrot.lane.b32.xlu0 %v3339_v4, %s3631_s22 }
 0xc51   :  { %v3341_v7 = vpop.eup %3340 }
 0xc52   :  { %v868_v8 = vadd.f32 1.0, %v3341_v7 }
 0xc54   :  { %3342 = vrcp.f32 %v868_v8 }
 0xc5e   :  { %v3343_v11 = vpop.eup %3342 }
 0xc5f   :  { %v872_v16 = vmul.f32 %v3343_v11, %v3920_v33 }
 0xcc2   :  { %v875_v13 = vpop.permute.xlu0 %874 }
 0xcc3   :  { %v877_v14 = vmul.f32 %v3343_v11, %v875_v13 }
 0xcc5   :  { %879 = vrot.lane.b32.xlu1 %v877_v14, %s3632_s29 }
 0xd37   :  { %v880_v17 = vpop.permute.xlu1 %879 }
 0xd38   :  { %v3967_v19 = vadd.f32 %v880_v17, %v872_v16 }
 0xd3a   :  { %3344 = vtanh.f32 %v3967_v19 }
 0xd44   :  { %v3345_v20 = vpop.eup %3344 }
 0xd45   :  { %885 = vrot.lane.b32.xlu0 %v3345_v20, %s3631_s22 }
 0xd49   :  { %893 = vrot.lane.b32.xlu0 %v716_v59, %s3631_s22 }
 0xdb7   :  { %v886_v21 = vpop.permute.xlu0 %885 }
 0xdb8   :  { %v888_v22 = vmul.f32 %v3343_v11, %v886_v21 }
 0xdba   :  { %890 = vrot.lane.b32.xlu1 %v888_v22, %s3632_s29 }
 0xdbb   :  { %v894_v23 = vpop.permute.xlu0 %893 }
 0xe2c   :  { %v891_v24 = vpop.permute.xlu1 %890 }
 0xe2d   :  { %v896_v25 = vsel %vm214_vm2, %v891_v24, %v894_v23 }
 0xe2e   :  { %2873 = vmatmul.mubr.msk.f32.vlgmr.msra.gmra.mrb[6].mxu0 %vm332_vm3, %v896_v25 }
 0xe2f   :  { %3174 = vmatpush3.bf16.msra.mxu0 %v3820_v35  ;;  %2913 = vmatprep.mubr.msk.f32.mxu0 %vm3629_vm0, %v3630_v1 }
 0xe30   :  { %3175 = vmatprep.subr.bf16.mxu0 %v3628_v0 }
 0xe33   :  { %3177 = vmatpush3.bf16.msra.mxu0 %v3826_v37 }
 0xe34   :  { %3178 = vmatprep.subr.bf16.mxu0 %v3628_v0 }
 0xe37   :  { %3180 = vmatpush3.bf16.msra.mxu0 %v3836_v40 }
 0xe38   :  { %3181 = vmatprep.subr.bf16.mxu0 %v3628_v0 }
 0xe3b   :  { %3183 = vmatpush3.bf16.msra.mxu0 %v3847_v44 }
 0xe3c   :  { %3196 = vmatprep.subr.bf16.mxu0 %v3628_v0 }
 0xf01   :  { %v966_v26 = vpop.f32.mrb[6].mxu0 }
 0xf02   :  { %v967_v27 = vadd.f32 %v3870_v52, %v966_v26  ;;  %v2874_v28 = vpop.f32.mrb[7].mxu0 }
 0xf04   :  { %3346 = vtanh.f32 %v967_v27  ;;  %v2574_v30 = vmul.f32 -1.442695, %v967_v27 }
 0xf06   :  { %3348 = vpow2.f32 %v2574_v30 }
 0xf0e   :  { %v3347_v29 = vpop.eup %3346 }
 0xf0f   :  { %979 = vrot.lane.b32.xlu1 %v3347_v29, %s3631_s22 }
 0xf10   :  { %v3349_v32 = vpop.eup %3348 }
 0xf11   :  { %v973_v33 = vadd.f32 1.0, %v3349_v32 }
 0xf13   :  { %3350 = vrcp.f32 %v973_v33 }
 0xf1d   :  { %v3351_v34 = vpop.eup %3350 }
 0xf1e   :  { %v977_v39 = vmul.f32 %v3351_v34, %v3942_v56 }
 0xf81   :  { %v980_v36 = vpop.permute.xlu1 %979 }
 0xf82   :  { %v982_v38 = vmul.f32 %v3351_v34, %v980_v36 }
 0xf84   :  { %984 = vrot.lane.b32.xlu0 %v982_v38, %s3632_s29 }
 0xff6   :  { %v985_v41 = vpop.permute.xlu0 %984 }
 0xff7   :  { %v3989_v42 = vadd.f32 %v985_v41, %v977_v39 }
 0xff9   :  { %3352 = vtanh.f32 %v3989_v42 }
0x1003   :  { %v3353_v31 = vpop.eup %3352 }
0x1004   :  { %990 = vrot.lane.b32.xlu1 %v3353_v31, %s3631_s22 }
0x1076   :  { %v991_v43 = vpop.permute.xlu1 %990 }
0x1077   :  { %v993_v45 = vmul.f32 %v3351_v34, %v991_v43 }
0x1079   :  { %995 = vrot.lane.b32.xlu0 %v993_v45, %s3632_s29 }
0x10eb   :  { %v996_v46 = vpop.permute.xlu0 %995 }
0x10ec   :  { %2884 = vmatmul.mubr.msk.f32.vlgmr.msra.gmra.mrb[10].mxu1 %vm214_vm2, %v996_v46 }
0x10ed   :  { %3168 = vmatpush3.bf16.msra.mxu1 %v3784_v5  ;;  %2894 = vmatprep.mubr.msk.f32.mxu1 %vm3629_vm0, %v3630_v1 }
0x10ee   :  { %3169 = vmatprep.subr.bf16.mxu1 %v3628_v0 }
0x10f1   :  { %3171 = vmatpush3.bf16.msra.mxu1 %v3787_v10 }
0x10f2   :  { %3184 = vmatprep.subr.bf16.mxu1 %v3628_v0 }
0x10f4   :  { %2895 = vmatmul.mubr.msk.f32.vlgmr.msra.gmra.mrb[12].mxu1 %vm214_vm2, %v891_v24 }
0x10f5   :  { %3186 = vmatpush3.bf16.msra.mxu1 %v3887_v9  ;;  %2924 = vmatprep.mubr.msk.f32.mxu1 %vm3629_vm0, %v3630_v1 }
0x10f6   :  { %3187 = vmatprep.subr.bf16.mxu1 %v3628_v0 }
0x10f9   :  { %3189 = vmatpush3.bf16.msra.mxu1 %v3893_v12 }
0x10fa   :  { %3190 = vmatprep.subr.bf16.mxu1 %v3628_v0 }
0x11bf   :  { %v4008_v47 = vpop.f32.mrb[10].mxu1 }
0x11c0   :  { %v2885_v48 = vpop.f32.mrb[11].mxu1 }
0x11c7   :  { %v1137_v49 = vpop.f32.mrb[12].mxu1 }
0x11c8   :  { %v1141_v50 = vadd.f32 %v1137_v49, %v3802_v15  ;;  %v2896_v51 = vpop.f32.mrb[13].mxu1 }
0x11ca   :  { %3354 = vtanh.f32 %v1141_v50  ;;  %v2577_v54 = vmul.f32 -1.442695, %v1141_v50 }
0x11cc   :  { %3356 = vpow2.f32 %v2577_v54 }
0x11d4   :  { %v3355_v53 = vpop.eup %3354 }
0x11d5   :  { %1151 = vrot.lane.b32.xlu1 %v3355_v53, %s3631_s22 }
0x11d6   :  { %v3357_v55 = vpop.eup %3356 }
0x11d7   :  { %v1145_v56 = vadd.f32 1.0, %v3357_v55 }
0x11d9   :  { %3358 = vrcp.f32 %v1145_v56 }
0x11e3   :  { %v3359_v57 = vpop.eup %3358 }
0x11e4   :  { %v1149_v60 = vmul.f32 %v3359_v57, %v3967_v19 }
0x1247   :  { %v1152_v58 = vpop.permute.xlu1 %1151 }
0x1248   :  { %v1154_v59 = vmul.f32 %v3359_v57, %v1152_v58 }
0x124a   :  { %1156 = vrot.lane.b32.xlu0 %v1154_v59, %s3632_s29 }
0x12bc   :  { %v1157_v62 = vpop.permute.xlu0 %1156 }
0x12bd   :  { %v4014_v63 = vadd.f32 %v1157_v62, %v1149_v60 }
0x12bf   :  { %3360 = vtanh.f32 %v4014_v63 }
0x12c9   :  { %v3361_v2 = vpop.eup %3360 }
0x12ca   :  { %1162 = vrot.lane.b32.xlu1 %v3361_v2, %s3631_s22 }
0x12ce   :  { %1170 = vrot.lane.b32.xlu1 %v993_v45, %s3631_s22 }
0x133c   :  { %v1163_v3 = vpop.permute.xlu1 %1162 }
0x133d   :  { %v1165_v4 = vmul.f32 %v3359_v57, %v1163_v3 }
0x133f   :  { %1167 = vrot.lane.b32.xlu0 %v1165_v4, %s3632_s29 }
0x1340   :  { %v1171_v6 = vpop.permute.xlu1 %1170 }
0x13b1   :  { %v1168_v7 = vpop.permute.xlu0 %1167 }
0x13b2   :  { %v1173_v8 = vsel %vm214_vm2, %v1168_v7, %v1171_v6 }
0x13b3   :  { %2914 = vmatmul.mubr.msk.f32.vlgmr.msra.gmra.mrb[8].mxu0 %vm332_vm3, %v1173_v8 }
0x13b4   :  { %3198 = vmatpush3.bf16.msra.mxu0 %v3820_v35  ;;  %2954 = vmatprep.mubr.msk.f32.mxu0 %vm3629_vm0, %v3630_v1 }
0x13b5   :  { %3199 = vmatprep.subr.bf16.mxu0 %v3628_v0 }
0x13b8   :  { %3201 = vmatpush3.bf16.msra.mxu0 %v3826_v37 }
0x13b9   :  { %3202 = vmatprep.subr.bf16.mxu0 %v3628_v0 }
0x13bc   :  { %3204 = vmatpush3.bf16.msra.mxu0 %v3836_v40 }
0x13bd   :  { %3205 = vmatprep.subr.bf16.mxu0 %v3628_v0 }
0x13c0   :  { %3207 = vmatpush3.bf16.msra.mxu0 %v3847_v44 }
0x13c1   :  { %3220 = vmatprep.subr.bf16.mxu0 %v3628_v0 }
0x1486   :  { %v1243_v11 = vpop.f32.mrb[8].mxu0 }
0x1487   :  { %v1244_v13 = vadd.f32 %v3870_v52, %v1243_v11  ;;  %v2915_v14 = vpop.f32.mrb[9].mxu0 }
0x1489   :  { %3362 = vtanh.f32 %v1244_v13  ;;  %v2579_v17 = vmul.f32 -1.442695, %v1244_v13 }
0x148b   :  { %3364 = vpow2.f32 %v2579_v17 }
0x1493   :  { %v3363_v16 = vpop.eup %3362 }
0x1494   :  { %1256 = vrot.lane.b32.xlu0 %v3363_v16, %s3631_s22 }
0x1495   :  { %v3365_v19 = vpop.eup %3364 }
0x1496   :  { %v1250_v20 = vadd.f32 1.0, %v3365_v19 }
0x1498   :  { %3366 = vrcp.f32 %v1250_v20 }
0x14a2   :  { %v3367_v21 = vpop.eup %3366 }
0x14a3   :  { %v1254_v24 = vmul.f32 %v3367_v21, %v3989_v42 }
0x1506   :  { %v1257_v22 = vpop.permute.xlu0 %1256 }
0x1507   :  { %v1259_v23 = vmul.f32 %v3367_v21, %v1257_v22 }
0x1509   :  { %1261 = vrot.lane.b32.xlu1 %v1259_v23, %s3632_s29 }
0x157b   :  { %v1262_v25 = vpop.permute.xlu1 %1261 }
0x157c   :  { %v4036_v26 = vadd.f32 %v1262_v25, %v1254_v24 }
0x157e   :  { %3368 = vtanh.f32 %v4036_v26 }
0x1588   :  { %v3369_v27 = vpop.eup %3368 }
0x1589   :  { %1267 = vrot.lane.b32.xlu0 %v3369_v27, %s3631_s22 }
0x15fb   :  { %v1268_v28 = vpop.permute.xlu0 %1267 }
0x15fc   :  { %v1270_v29 = vmul.f32 %v3367_v21, %v1268_v28 }
0x15fe   :  { %1272 = vrot.lane.b32.xlu1 %v1270_v29, %s3632_s29 }
0x1670   :  { %v1273_v30 = vpop.permute.xlu1 %1272 }
0x1671   :  { %2925 = vmatmul.mubr.msk.f32.vlgmr.msra.gmra.mrb[14].mxu1 %vm214_vm2, %v1273_v30 }
0x1672   :  { %3192 = vmatpush3.bf16.msra.mxu1 %v3784_v5  ;;  %2935 = vmatprep.mubr.msk.f32.mxu1 %vm3629_vm0, %v3630_v1 }
0x1673   :  { %3193 = vmatprep.subr.bf16.mxu1 %v3628_v0 }
0x1676   :  { %3195 = vmatpush3.bf16.msra.mxu1 %v3787_v10 }
0x1677   :  { %3208 = vmatprep.subr.bf16.mxu1 %v3628_v0 }
0x1679   :  { %2936 = vmatmul.mubr.msk.f32.vlgmr.msra.gmra.mrb[16].mxu1 %vm214_vm2, %v1168_v7 }
0x167a   :  { %3210 = vmatpush3.bf16.msra.mxu1 %v3887_v9  ;;  %2965 = vmatprep.mubr.msk.f32.mxu1 %vm3629_vm0, %v3630_v1 }
0x167b   :  { %3211 = vmatprep.subr.bf16.mxu1 %v3628_v0 }
0x167e   :  { %3213 = vmatpush3.bf16.msra.mxu1 %v3893_v12 }
0x167f   :  { %3214 = vmatprep.subr.bf16.mxu1 %v3628_v0 }
0x1744   :  { %v4055_v32 = vpop.f32.mrb[14].mxu1 }
0x1745   :  { %v2926_v33 = vpop.f32.mrb[15].mxu1 }
0x174c   :  { %v1414_v34 = vpop.f32.mrb[16].mxu1 }
0x174d   :  { %v1418_v36 = vadd.f32 %v1414_v34, %v3802_v15  ;;  %v2937_v38 = vpop.f32.mrb[17].mxu1 }
0x174f   :  { %3370 = vtanh.f32 %v1418_v36  ;;  %v2582_v41 = vmul.f32 -1.442695, %v1418_v36 }
0x1751   :  { %3372 = vpow2.f32 %v2582_v41 }
0x1759   :  { %v3371_v39 = vpop.eup %3370 }
0x175a   :  { %1428 = vrot.lane.b32.xlu0 %v3371_v39, %s3631_s22 }
0x175b   :  { %v3373_v42 = vpop.eup %3372 }
0x175c   :  { %v1422_v31 = vadd.f32 1.0, %v3373_v42 }
0x175e   :  { %3374 = vrcp.f32 %v1422_v31 }
0x1768   :  { %v3375_v43 = vpop.eup %3374 }
0x1769   :  { %v1426_v48 = vmul.f32 %v3375_v43, %v4014_v63 }
0x17cc   :  { %v1429_v45 = vpop.permute.xlu0 %1428 }
0x17cd   :  { %v1431_v46 = vmul.f32 %v3375_v43, %v1429_v45 }
0x17cf   :  { %1433 = vrot.lane.b32.xlu1 %v1431_v46, %s3632_s29 }
0x1841   :  { %v1434_v49 = vpop.permute.xlu1 %1433 }
0x1842   :  { %v4061_v50 = vadd.f32 %v1434_v49, %v1426_v48 }
0x1844   :  { %3376 = vtanh.f32 %v4061_v50 }
0x184e   :  { %v3377_v51 = vpop.eup %3376 }
0x184f   :  { %1439 = vrot.lane.b32.xlu0 %v3377_v51, %s3631_s22 }
0x1853   :  { %1447 = vrot.lane.b32.xlu0 %v1270_v29, %s3631_s22 }
0x18c1   :  { %v1440_v53 = vpop.permute.xlu0 %1439 }
0x18c2   :  { %v1442_v54 = vmul.f32 %v3375_v43, %v1440_v53 }
0x18c4   :  { %1444 = vrot.lane.b32.xlu1 %v1442_v54, %s3632_s29 }
0x18c5   :  { %v1448_v55 = vpop.permute.xlu0 %1447 }
0x1936   :  { %v1445_v56 = vpop.permute.xlu1 %1444 }
0x1937   :  { %v1450_v57 = vsel %vm214_vm2, %v1445_v56, %v1448_v55 }
0x1938   :  { %2955 = vmatmul.mubr.msk.f32.vlgmr.msra.gmra.mrb[10].mxu0 %vm332_vm3, %v1450_v57 }
0x1939   :  { %3222 = vmatpush3.bf16.msra.mxu0 %v3820_v35  ;;  %2995 = vmatprep.mubr.msk.f32.mxu0 %vm3629_vm0, %v3630_v1 }
0x193a   :  { %3223 = vmatprep.subr.bf16.mxu0 %v3628_v0 }
0x193d   :  { %3225 = vmatpush3.bf16.msra.mxu0 %v3826_v37 }
0x193e   :  { %3226 = vmatprep.subr.bf16.mxu0 %v3628_v0 }
0x1941   :  { %3228 = vmatpush3.bf16.msra.mxu0 %v3836_v40 }
0x1942   :  { %3229 = vmatprep.subr.bf16.mxu0 %v3628_v0 }
0x1945   :  { %3231 = vmatpush3.bf16.msra.mxu0 %v3847_v44 }
0x1946   :  { %3244 = vmatprep.subr.bf16.mxu0 %v3628_v0 }
0x1a0b   :  { %v1520_v58 = vpop.f32.mrb[10].mxu0 }
0x1a0c   :  { %v1521_v59 = vadd.f32 %v3870_v52, %v1520_v58  ;;  %v2956_v60 = vpop.f32.mrb[11].mxu0 }
0x1a0e   :  { %3378 = vtanh.f32 %v1521_v59  ;;  %v2584_v63 = vmul.f32 -1.442695, %v1521_v59 }
0x1a10   :  { %3380 = vpow2.f32 %v2584_v63 }
0x1a18   :  { %v3379_v62 = vpop.eup %3378 }
0x1a19   :  { %1533 = vrot.lane.b32.xlu1 %v3379_v62, %s3631_s22 }
0x1a1a   :  { %v3381_v2 = vpop.eup %3380 }
0x1a1b   :  { %v1527_v3 = vadd.f32 1.0, %v3381_v2 }
0x1a1d   :  { %3382 = vrcp.f32 %v1527_v3 }
0x1a27   :  { %v3383_v4 = vpop.eup %3382 }
0x1a28   :  { %v1531_v8 = vmul.f32 %v3383_v4, %v4036_v26 }
0x1a8b   :  { %v1534_v6 = vpop.permute.xlu1 %1533 }
0x1a8c   :  { %v1536_v7 = vmul.f32 %v3383_v4, %v1534_v6 }
0x1a8e   :  { %1538 = vrot.lane.b32.xlu0 %v1536_v7, %s3632_s29 }
0x1b00   :  { %v1539_v11 = vpop.permute.xlu0 %1538 }
0x1b01   :  { %v4083_v13 = vadd.f32 %v1539_v11, %v1531_v8 }
0x1b03   :  { %3384 = vtanh.f32 %v4083_v13 }
0x1b0d   :  { %v3385_v14 = vpop.eup %3384 }
0x1b0e   :  { %1544 = vrot.lane.b32.xlu1 %v3385_v14, %s3631_s22 }
0x1b80   :  { %v1545_v16 = vpop.permute.xlu1 %1544 }
0x1b81   :  { %v1547_v17 = vmul.f32 %v3383_v4, %v1545_v16 }
0x1b83   :  { %1549 = vrot.lane.b32.xlu0 %v1547_v17, %s3632_s29 }
0x1bf5   :  { %v1550_v19 = vpop.permute.xlu0 %1549 }
0x1bf6   :  { %2966 = vmatmul.mubr.msk.f32.vlgmr.msra.gmra.mrb[18].mxu1 %vm214_vm2, %v1550_v19 }
0x1bf7   :  { %3216 = vmatpush3.bf16.msra.mxu1 %v3784_v5  ;;  %2976 = vmatprep.mubr.msk.f32.mxu1 %vm3629_vm0, %v3630_v1 }
0x1bf8   :  { %3217 = vmatprep.subr.bf16.mxu1 %v3628_v0 }
0x1bfb   :  { %3219 = vmatpush3.bf16.msra.mxu1 %v3787_v10 }
0x1bfc   :  { %3232 = vmatprep.subr.bf16.mxu1 %v3628_v0 }
0x1bfe   :  { %2977 = vmatmul.mubr.msk.f32.vlgmr.msra.gmra.mrb[20].mxu1 %vm214_vm2, %v1445_v56 }
0x1bff   :  { %3234 = vmatpush3.bf16.msra.mxu1 %v3887_v9  ;;  %3006 = vmatprep.mubr.msk.f32.mxu1 %vm3629_vm0, %v3630_v1 }
0x1c00   :  { %3235 = vmatprep.subr.bf16.mxu1 %v3628_v0 }
0x1c03   :  { %3237 = vmatpush3.bf16.msra.mxu1 %v3893_v12 }
0x1c04   :  { %3238 = vmatprep.subr.bf16.mxu1 %v3628_v0 }
0x1cc9   :  { %v4102_v20 = vpop.f32.mrb[18].mxu1 }
0x1cca   :  { %v2967_v21 = vpop.f32.mrb[19].mxu1 }
0x1cd1   :  { %v1691_v22 = vpop.f32.mrb[20].mxu1 }
0x1cd2   :  { %v1695_v23 = vadd.f32 %v1691_v22, %v3802_v15  ;;  %v2978_v24 = vpop.f32.mrb[21].mxu1 }
0x1cd4   :  { %3386 = vtanh.f32 %v1695_v23  ;;  %v2587_v26 = vmul.f32 -1.442695, %v1695_v23 }
0x1cd6   :  { %3388 = vpow2.f32 %v2587_v26 }
0x1cde   :  { %v3387_v25 = vpop.eup %3386 }
0x1cdf   :  { %1705 = vrot.lane.b32.xlu1 %v3387_v25, %s3631_s22 }
0x1ce0   :  { %v3389_v27 = vpop.eup %3388 }
0x1ce1   :  { %v1699_v28 = vadd.f32 1.0, %v3389_v27 }
0x1ce3   :  { %3390 = vrcp.f32 %v1699_v28 }
0x1ced   :  { %v3391_v29 = vpop.eup %3390 }
0x1cee   :  { %v1703_v34 = vmul.f32 %v3391_v29, %v4061_v50 }
0x1d51   :  { %v1706_v30 = vpop.permute.xlu1 %1705 }
0x1d52   :  { %v1708_v33 = vmul.f32 %v3391_v29, %v1706_v30 }
0x1d54   :  { %1710 = vrot.lane.b32.xlu0 %v1708_v33, %s3632_s29 }
0x1dc6   :  { %v1711_v36 = vpop.permute.xlu0 %1710 }
0x1dc7   :  { %v4108_v38 = vadd.f32 %v1711_v36, %v1703_v34 }
0x1dc9   :  { %3392 = vtanh.f32 %v4108_v38 }
0x1dd3   :  { %v3393_v39 = vpop.eup %3392 }
0x1dd4   :  { %1716 = vrot.lane.b32.xlu1 %v3393_v39, %s3631_s22 }
0x1dd8   :  { %1724 = vrot.lane.b32.xlu1 %v1547_v17, %s3631_s22 }
0x1e46   :  { %v1717_v41 = vpop.permute.xlu1 %1716 }
0x1e47   :  { %v1719_v42 = vmul.f32 %v3391_v29, %v1717_v41 }
0x1e49   :  { %1721 = vrot.lane.b32.xlu0 %v1719_v42, %s3632_s29 }
0x1e4a   :  { %v1725_v31 = vpop.permute.xlu1 %1724 }
0x1ebb   :  { %v1722_v43 = vpop.permute.xlu0 %1721 }
0x1ebc   :  { %v1727_v45 = vsel %vm214_vm2, %v1722_v43, %v1725_v31 }
0x1ebd   :  { %2996 = vmatmul.mubr.msk.f32.vlgmr.msra.gmra.mrb[12].mxu0 %vm332_vm3, %v1727_v45 }
0x1ebe   :  { %3246 = vmatpush3.bf16.msra.mxu0 %v3820_v35  ;;  %3036 = vmatprep.mubr.msk.f32.mxu0 %vm3629_vm0, %v3630_v1 }
0x1ebf   :  { %3247 = vmatprep.subr.bf16.mxu0 %v3628_v0 }
0x1ec2   :  { %3249 = vmatpush3.bf16.msra.mxu0 %v3826_v37 }
0x1ec3   :  { %3250 = vmatprep.subr.bf16.mxu0 %v3628_v0 }
0x1ec6   :  { %3252 = vmatpush3.bf16.msra.mxu0 %v3836_v40 }
0x1ec7   :  { %3253 = vmatprep.subr.bf16.mxu0 %v3628_v0 }
0x1eca   :  { %3255 = vmatpush3.bf16.msra.mxu0 %v3847_v44 }
0x1ecb   :  { %3268 = vmatprep.subr.bf16.mxu0 %v3628_v0 }
0x1f90   :  { %v1797_v46 = vpop.f32.mrb[12].mxu0 }
0x1f91   :  { %v1798_v48 = vadd.f32 %v3870_v52, %v1797_v46  ;;  %v2997_v49 = vpop.f32.mrb[13].mxu0 }
0x1f93   :  { %3394 = vtanh.f32 %v1798_v48  ;;  %v2589_v51 = vmul.f32 -1.442695, %v1798_v48 }
0x1f95   :  { %3396 = vpow2.f32 %v2589_v51 }
0x1f9d   :  { %v3395_v50 = vpop.eup %3394 }
0x1f9e   :  { %1810 = vrot.lane.b32.xlu0 %v3395_v50, %s3631_s22 }
0x1f9f   :  { %v3397_v53 = vpop.eup %3396 }
0x1fa0   :  { %v1804_v54 = vadd.f32 1.0, %v3397_v53 }
0x1fa2   :  { %3398 = vrcp.f32 %v1804_v54 }
0x1fac   :  { %v3399_v55 = vpop.eup %3398 }
0x1fad   :  { %v1808_v58 = vmul.f32 %v3399_v55, %v4083_v13 }
0x2010   :  { %v1811_v56 = vpop.permute.xlu0 %1810 }
0x2011   :  { %v1813_v57 = vmul.f32 %v3399_v55, %v1811_v56 }
0x2013   :  { %1815 = vrot.lane.b32.xlu1 %v1813_v57, %s3632_s29 }
0x2085   :  { %v1816_v59 = vpop.permute.xlu1 %1815 }
0x2086   :  { %v4130_v60 = vadd.f32 %v1816_v59, %v1808_v58 }
0x2088   :  { %3400 = vtanh.f32 %v4130_v60 }
0x2092   :  { %v3401_v62 = vpop.eup %3400 }
0x2093   :  { %1821 = vrot.lane.b32.xlu0 %v3401_v62, %s3631_s22 }
0x2105   :  { %v1822_v63 = vpop.permute.xlu0 %1821 }
0x2106   :  { %v1824_v2 = vmul.f32 %v3399_v55, %v1822_v63 }
0x2108   :  { %1826 = vrot.lane.b32.xlu1 %v1824_v2, %s3632_s29 }
0x217a   :  { %v1827_v3 = vpop.permute.xlu1 %1826 }
0x217b   :  { %3007 = vmatmul.mubr.msk.f32.vlgmr.msra.gmra.mrb[22].mxu1 %vm214_vm2, %v1827_v3 }
0x217c   :  { %3240 = vmatpush3.bf16.msra.mxu1 %v3784_v5  ;;  %3017 = vmatprep.mubr.msk.f32.mxu1 %vm3629_vm0, %v3630_v1 }
0x217d   :  { %3241 = vmatprep.subr.bf16.mxu1 %v3628_v0 }
0x2180   :  { %3243 = vmatpush3.bf16.msra.mxu1 %v3787_v10 }
0x2181   :  { %3256 = vmatprep.subr.bf16.mxu1 %v3628_v0 }
0x2183   :  { %3018 = vmatmul.mubr.msk.f32.vlgmr.msra.gmra.mrb[24].mxu1 %vm214_vm2, %v1722_v43 }
0x2184   :  { %3258 = vmatpush3.bf16.msra.mxu1 %v3887_v9  ;;  %3047 = vmatprep.mubr.msk.f32.mxu1 %vm3629_vm0, %v3630_v1 }
0x2185   :  { %3259 = vmatprep.subr.bf16.mxu1 %v3628_v0 }
0x2188   :  { %3261 = vmatpush3.bf16.msra.mxu1 %v3893_v12 }
0x2189   :  { %3262 = vmatprep.subr.bf16.mxu1 %v3628_v0 }
0x224e   :  { %v4149_v4 = vpop.f32.mrb[22].mxu1 }
0x224f   :  { %v3008_v6 = vpop.f32.mrb[23].mxu1 }
0x2256   :  { %v1968_v7 = vpop.f32.mrb[24].mxu1 }
0x2257   :  { %v1972_v8 = vadd.f32 %v1968_v7, %v3802_v15  ;;  %v3019_v11 = vpop.f32.mrb[25].mxu1  ;;  %v3434_v7 = vld [vmem:[%s4296_s7] ss:$0 sm:$0xff] }
0x2259   :  { %3402 = vtanh.f32 %v1972_v8  ;;  %v2592_v14 = vmul.f32 -1.442695, %v1972_v8 }
0x225b   :  { %3404 = vpow2.f32 %v2592_v14 }
0x2263   :  { %v3403_v13 = vpop.eup %3402 }
0x2264   :  { %1982 = vrot.lane.b32.xlu0 %v3403_v13, %s3631_s22 }
0x2265   :  { %v3405_v16 = vpop.eup %3404 }
0x2266   :  { %v1976_v17 = vadd.f32 1.0, %v3405_v16 }
0x2268   :  { %3406 = vrcp.f32 %v1976_v17 }
0x2272   :  { %v3407_v19 = vpop.eup %3406 }
0x2273   :  { %v1980_v23 = vmul.f32 %v3407_v19, %v4108_v38 }
0x22d6   :  { %v1983_v21 = vpop.permute.xlu0 %1982 }
0x22d7   :  { %v1985_v22 = vmul.f32 %v3407_v19, %v1983_v21 }
0x22d9   :  { %1987 = vrot.lane.b32.xlu1 %v1985_v22, %s3632_s29 }
0x234b   :  { %v1988_v24 = vpop.permute.xlu1 %1987 }
0x234c   :  { %v4155_v25 = vadd.f32 %v1988_v24, %v1980_v23 }
0x234e   :  { %3408 = vtanh.f32 %v4155_v25 }
0x2358   :  { %v3409_v26 = vpop.eup %3408 }
0x2359   :  { %1993 = vrot.lane.b32.xlu0 %v3409_v26, %s3631_s22 }
0x235d   :  { %2001 = vrot.lane.b32.xlu0 %v1824_v2, %s3631_s22 }
0x23cb   :  { %v1994_v27 = vpop.permute.xlu0 %1993 }
0x23cc   :  { %v1996_v28 = vmul.f32 %v3407_v19, %v1994_v27  ;;  %v2564_v27 = vld [vmem:[%s4298_s9] ss:$0 sm:$0xff]  ;;  %s3636_s9 = smov 96  }
0x23ce   :  { %1998 = vrot.lane.b32.xlu1 %v1996_v28, %s3632_s29  ;;  %v789_v28 = vadd.f32 %v2564_v27, %v3961_v61  ;;  %v1620_v61 = vadd.f32 %v2564_v27, %v4102_v20 }
0x23cf   :  { %v2002_v29 = vpop.permute.xlu0 %2001 }
0x2440   :  { %v1999_v30 = vpop.permute.xlu1 %1998 }
0x2441   :  { %v2004_v33 = vsel %vm214_vm2, %v1999_v30, %v2002_v29  ;;  %v1343_v29 = vadd.f32 %v2564_v27, %v4055_v32 }
0x2442   :  { %3037 = vmatmul.mubr.msk.f32.vlgmr.msra.gmra.mrb[14].mxu0 %vm332_vm3, %v2004_v33 }
0x2443   :  { %3270 = vmatpush3.bf16.msra.mxu0 %v3820_v35  ;;  %3077 = vmatprep.mubr.msk.f32.mxu0 %vm3629_vm0, %v3630_v1 }
0x2444   :  { %3271 = vmatprep.subr.bf16.mxu0 %v3628_v0 }
0x2447   :  { %3273 = vmatpush3.bf16.msra.mxu0 %v3826_v37 }
0x2448   :  { %3274 = vmatprep.subr.bf16.mxu0 %v3628_v0 }
0x244b   :  { %3276 = vmatpush3.bf16.msra.mxu0 %v3836_v40 }
0x244c   :  { %3277 = vmatprep.subr.bf16.mxu0 %v3628_v0 }
0x244f   :  { %3279 = vmatpush3.bf16.msra.mxu0 %v3847_v44 }
0x2515   :  { %v2074_v34 = vpop.f32.mrb[14].mxu0 }
0x2516   :  { %v2075_v36 = vadd.f32 %v3870_v52, %v2074_v34  ;;  %v3038_v38 = vpop.f32.mrb[15].mxu0 }
0x2518   :  { %3410 = vtanh.f32 %v2075_v36  ;;  %v2594_v39 = vmul.f32 -1.442695, %v2075_v36  ;;  %v1066_v36 = vadd.f32 %v2564_v27, %v4008_v47  ;;  %v512_v47 = vadd.f32 %v2564_v27, %v3914_v18 }
0x251a   :  { %3412 = vpow2.f32 %v2594_v39 }
0x2522   :  { %v3411_v35 = vpop.eup %3410 }
0x2523   :  { %2087 = vrot.lane.b32.xlu1 %v3411_v35, %s3631_s22 }
0x2524   :  { %v3413_v41 = vpop.eup %3412 }
0x2525   :  { %v2081_v37 = vadd.f32 1.0, %v3413_v41 }
0x2527   :  { %3414 = vrcp.f32 %v2081_v37 }
0x2531   :  { %v3415_v42 = vpop.eup %3414 }
0x2532   :  { %v2085_v44 = vmul.f32 %v3415_v42, %v4130_v60 }
0x2595   :  { %v2088_v31 = vpop.permute.xlu1 %2087 }
0x2596   :  { %v2090_v40 = vmul.f32 %v3415_v42, %v2088_v31 }
0x2598   :  { %2092 = vrot.lane.b32.xlu0 %v2090_v40, %s3632_s29 }
0x260a   :  { %v2093_v43 = vpop.permute.xlu0 %2092 }
0x260b   :  { %v4176_v45 = vadd.f32 %v2093_v43, %v2085_v44 }
0x260d   :  { %3416 = vtanh.f32 %v4176_v45 }
0x2617   :  { %v3417_v52 = vpop.eup %3416 }
0x2618   :  { %2098 = vrot.lane.b32.xlu1 %v3417_v52, %s3631_s22 }
0x268a   :  { %v2099_v46 = vpop.permute.xlu1 %2098 }
0x268b   :  { %v2101_v48 = vmul.f32 %v3415_v42, %v2099_v46 }
0x268d   :  { %2103 = vrot.lane.b32.xlu0 %v2101_v48, %s3632_s29 }
0x26ff   :  { %v2104_v49 = vpop.permute.xlu0 %2103 }
0x2700   :  { %3048 = vmatmul.mubr.msk.f32.vlgmr.msra.gmra.mrb[26].mxu1 %vm214_vm2, %v2104_v49 }
0x2701   :  { %3264 = vmatpush3.bf16.msra.mxu1 %v3784_v5  ;;  %3058 = vmatprep.mubr.msk.f32.mxu1 %vm3629_vm0, %v3630_v1 }
0x2702   :  { %3265 = vmatprep.subr.bf16.mxu1 %v3628_v0 }
0x2705   :  { %3267 = vmatpush3.bf16.msra.mxu1 %v3787_v10 }
0x2706   :  { %3280 = vmatprep.subr.bf16.mxu1 %v3628_v0 }
0x2708   :  { %3059 = vmatmul.mubr.msk.f32.vlgmr.msra.gmra.mrb[28].mxu1 %vm214_vm2, %v1999_v30  ;;  %v1897_v30 = vadd.f32 %v2564_v27, %v4149_v4 }
0x2709   :  { %3282 = vmatpush3.bf16.msra.mxu1 %v3887_v9  ;;  %3088 = vmatprep.mubr.msk.f32.mxu1 %vm3629_vm0, %v3630_v1 }
0x270a   :  { %3283 = vmatprep.subr.bf16.mxu1 %v3628_v0 }
0x270d   :  { %3285 = vmatpush3.bf16.msra.mxu1 %v3893_v12 }
0x27d3   :  { %v4194_v5 = vpop.f32.mrb[26].mxu1 }
0x27d4   :  { %v3049_v50 = vpop.f32.mrb[27].mxu1  ;;  %v2174_v32 = vadd.f32 %v2564_v27, %v4194_v5 }
0x27db   :  { %v2245_v51 = vpop.f32.mrb[28].mxu1 }
0x27dc   :  { %v2249_v53 = vadd.f32 %v2245_v51, %v3802_v15  ;;  %v3060_v10 = vpop.f32.mrb[29].mxu1 }
0x27de   :  { %3418 = vtanh.f32 %v2249_v53  ;;  %v2597_v55 = vmul.f32 -1.442695, %v2249_v53 }
0x27e0   :  { %3420 = vpow2.f32 %v2597_v55 }
0x27e8   :  { %v3419_v54 = vpop.eup %3418 }
0x27e9   :  { %2259 = vrot.lane.b32.xlu1 %v3419_v54, %s3631_s22 }
0x27ea   :  { %v3421_v9 = vpop.eup %3420 }
0x27eb   :  { %v2253_v56 = vadd.f32 1.0, %v3421_v9 }
0x27ed   :  { %3422 = vrcp.f32 %v2253_v56 }
0x27f7   :  { %v3423_v1 = vpop.eup %3422 }
0x27f8   :  { %v2257_v12 = vmul.f32 %v3423_v1, %v4155_v25 }
0x285b   :  { %v2260_v0 = vpop.permute.xlu1 %2259 }
0x285c   :  { %v2262_v57 = vmul.f32 %v3423_v1, %v2260_v0 }
0x285e   :  { %2264 = vrot.lane.b32.xlu0 %v2262_v57, %s3632_s29 }
0x28d0   :  { %v2265_v58 = vpop.permute.xlu0 %2264 }
0x28d1   :  { %v2267_v59 = vadd.f32 %v2265_v58, %v2257_v12 }
0x28d3   :  { %3424 = vtanh.f32 %v2267_v59 }
0x28dd   :  { %v3425_v15 = vpop.eup %3424 }
0x28de   :  { %2270 = vrot.lane.b32.xlu1 %v3425_v15, %s3631_s22 }
0x28e2   :  { %2278 = vrot.lane.b32.xlu1 %v2101_v48, %s3631_s22 }
0x2950   :  { %v2271_v60 = vpop.permute.xlu1 %2270 }
0x2951   :  { %v2273_v62 = vmul.f32 %v3423_v1, %v2271_v60 }
0x2953   :  { %2275 = vrot.lane.b32.xlu0 %v2273_v62, %s3632_s29 }
0x2954   :  { %v2279_v63 = vpop.permute.xlu1 %2278 }
0x29c5   :  { %v2276_v2 = vpop.permute.xlu0 %2275 }
0x29c6   :  { %v2281_v3 = vsel %vm214_vm2, %v2276_v2, %v2279_v63  ;;  %2494 = vst.msk [vmem:[#allocation12] sm:$0xff] %vm214_vm2, %v2276_v2 }
0x29c7   :  { %3078 = vmatmul.mubr.msk.f32.vlgmr.msra.gmra.mrb[16].mxu0 %vm332_vm3, %v2281_v3 }
0x2a9a   :  { %v2351_v6 = vpop.f32.mrb[16].mxu0 }
0x2a9b   :  { %v2352_v8 = vadd.f32 %v3434_v7, %v2351_v6  ;;  %v3079_v11 = vpop.f32.mrb[17].mxu0 }
0x2a9d   :  { %3426 = vtanh.f32 %v2352_v8  ;;  %v2599_v14 = vmul.f32 -1.442695, %v2352_v8 }
0x2a9f   :  { %3428 = vpow2.f32 %v2599_v14 }
0x2aa7   :  { %v3427_v13 = vpop.eup %3426 }
0x2aa8   :  { %2364 = vrot.lane.b32.xlu0 %v3427_v13, %s3631_s22 }
0x2aa9   :  { %v3429_v16 = vpop.eup %3428 }
0x2aaa   :  { %v2358_v17 = vadd.f32 1.0, %v3429_v16 }
0x2aac   :  { %3430 = vrcp.f32 %v2358_v17 }
0x2ab6   :  { %v3431_v19 = vpop.eup %3430 }
0x2ab7   :  { %v2362_v23 = vmul.f32 %v3431_v19, %v4176_v45 }
0x2b1a   :  { %v2365_v21 = vpop.permute.xlu0 %2364 }
0x2b1b   :  { %v2367_v22 = vmul.f32 %v3431_v19, %v2365_v21 }
0x2b1d   :  { %2369 = vrot.lane.b32.xlu1 %v2367_v22, %s3632_s29 }
0x2b8f   :  { %v2370_v24 = vpop.permute.xlu1 %2369 }
0x2b90   :  { %v4212_v25 = vadd.f32 %v2370_v24, %v2362_v23 }
0x2b92   :  { %3432 = vtanh.f32 %v4212_v25 }
0x2b9c   :  { %v3433_v26 = vpop.eup %3432 }
0x2b9d   :  { %2375 = vrot.lane.b32.xlu0 %v3433_v26, %s3631_s22 }
0x2ba1   :  { %2455 = vrot.lane.b32.xlu0 %v789_v28, %s3633_s19 }
0x2ba5   :  { %2463 = vrot.lane.b32.xlu0 %v1343_v29, %s3634_s21 }
0x2ba9   :  { %2471 = vrot.lane.b32.xlu0 %v1897_v30, %s3635_s23 }
0x2c0f   :  { %v2376_v33 = vpop.permute.xlu0 %2375 }
0x2c10   :  { %v2378_v34 = vmul.f32 %v3431_v19, %v2376_v33 }
0x2c12   :  { %2380 = vrot.lane.b32.xlu1 %v2378_v34, %s3632_s29 }
0x2c13   :  { %v2456_v4 = vpop.permute.xlu0 %2455 }
0x2c14   :  { %v2482_v35 = vsel %vm126_vm1, %v512_v47, %v2456_v4 }
0x2c16   :  { %2459 = vrot.lane.b32.xlu1 %v1066_v36, %s3632_s29 }
0x2c17   :  { %v2464_v39 = vpop.permute.xlu0 %2463 }
0x2c1a   :  { %2467 = vrot.lane.b32.xlu1 %v1620_v61, %s3631_s22  ;;  %s3637_s22 = smov [#allocation12]  }
0x2c1b   :  { %v2472_v40 = vpop.permute.xlu0 %2471  ;;  %s2524_s29 = sshll.u32 %s3637_s22, 4  ;;  %s2525_s29 = int_to_ptr.vmem [resolvable:$true] %s2524_s29 }
0x2c1c   :  { %s3545_s24 = scalar_lea.vmem %s2525_s29, 256  ;;  %p3550_p13 = scmp.lt.s32.totalorder %s2525_s29, %s2525_s29 }
0x2c1d   :  { %p3546_p12 = scmp.ne.s32.totalorder %s2525_s29, %s3545_s24  ;;  %p3551_p0 = scmp.lt.s32.totalorder %s3545_s24, %s3545_s24 }
0x2c1e   :  { %2475 = vrot.lane.b32.xlu1 %v2174_v32, %s3636_s9 }
0x2c1f   :  { %p3552_p1 = por %p3551_p0, %p3550_p13 }
0x2c21   :  { %p3553_p2 = pnand %p3552_p1, %p3546_p12 }
0x2c22   :  { %2496 = vrot.lane.b32.xlu1 %v2267_v59, %s3636_s9 }
0x2c84   :  { %v2381_v38 = vpop.permute.xlu1 %2380 }
0x2c85   :  { %2502 = vst.msk [vmem:[#allocation12 + $0x8] sm:$0xff] %vm214_vm2, %v2381_v38  ;;  %3089 = vmatmul.mubr.msk.f32.vlgmr.msra.gmra.mrb[30].mxu1 %vm214_vm2, %v2381_v38 }
0x2c88   :  { %v2460_v20 = vpop.permute.xlu1 %2459 }
0x2c89   :  { %v2483_v41 = vsel %vm214_vm2, %v2482_v35, %v2460_v20 }
0x2c8a   :  { %v2485_v42 = vsel %vm2484_vm4, %v2483_v41, %v2464_v39 }
0x2c8c   :  { %v2468_v37 = vpop.permute.xlu1 %2467 }
0x2c8d   :  { %v2486_v31 = vsel %vm332_vm3, %v2485_v42, %v2468_v37 }
0x2c8e   :  { %v2488_v43 = vsel %vm2487_vm5, %v2486_v31, %v2472_v40 }
0x2c90   :  { %v2476_v44 = vpop.permute.xlu1 %2475 }
0x2c91   :  { %v2490_v45 = vsel %vm2489_vm6, %v2488_v43, %v2476_v44 }
0x2c94   :  { %v2497_v52 = vpop.permute.xlu1 %2496 }
0x2c95   :  { %2499 = vst.msk [vmem:[#allocation14] sm:$0xff] %vm214_vm2, %v2497_v52 }
0x2c96   :  { %3556 = shalt.err (!%p3553_p2)
}
0x2c97   :  { %s3557_s25 = scalar_lea.hbm %s4300_s11, 256 }
0x2c98   :  { %p3558_p3 = scmp.ne.s32.totalorder %s4300_s11, %s3557_s25  ;;  %p3561_p4 = scmp.lt.u32.totalorder %s3557_s25, %s4300_s11 }
0x2c9a   :  { %p3563_p5 = pnand %p3561_p4, %p3558_p3 }
0x2c9c   :  { %3566 = shalt.err (!%p3563_p5)
}
0x2c9d   :  { %2530 = dma.vmem_to_hbm [thread:$0]  %s2525_s29, 256, %s4300_s11, [#allocation13], %s3622_s13, %s3622_s13, %s3623_s14   ;;  %vm2491_vm7 = vcmask 916480  }
0x2c9e   :  { %s3638_s28 = smov 112   ;;  %s3639_s5 = smov [#allocation11]  }
0x2c9f   :  { %s2515_s30 = sshll.u32 %s3639_s5, 4  ;;  %s3640_s15 = smov [#allocation14]   ;;  %s2516_s30 = int_to_ptr.vmem [resolvable:$true] %s2515_s30 }
0x2ca0   :  { %s2536_s16 = sshll.u32 %s3640_s15, 4  ;;  %s3567_s11 = scalar_lea.vmem %s2516_s30, 128  ;;  %s4254_s16 = int_to_ptr.vmem [resolvable:$true] %s2536_s16 }
0x2ca1   :  { %p3568_p6 = scmp.ne.s32.totalorder %s2516_s30, %s3567_s11  ;;  %p3572_p7 = scmp.lt.s32.totalorder %s2516_s30, %s2516_s30 }
0x2ca2   :  { %p3573_p8 = scmp.lt.s32.totalorder %s3567_s11, %s3567_s11 }
0x2ca4   :  { %p3574_p9 = por %p3573_p8, %p3572_p7 }
0x2ca6   :  { %p3575_p10 = pnand %p3574_p9, %p3568_p6 }
0x2d58   :  { %v2450_v18 = vpop.f32.mrb[30].mxu1 }
0x2d59   :  { %v2451_v46 = vadd.f32 %v2564_v27, %v2450_v18  ;;  %v3090_v48 = vpop.f32.mrb[31].mxu1 }
0x2d5b   :  { %2479 = vrot.lane.b32.xlu0 %v2451_v46, %s3638_s28 }
0x2d5f   :  { %2504 = vrot.lane.b32.xlu0 %v4212_v25, %s3636_s9 }
0x2dcd   :  { %v2480_v49 = vpop.permute.xlu0 %2479 }
0x2dce   :  { %v2492_v5 = vsel %vm2491_vm7, %v2490_v45, %v2480_v49 }
0x2dcf   :  { %2493 = vst [vmem:[#allocation11] sm:$0xff] %v2492_v5 }
0x2dd0   :  { %3578 = shalt.err (!%p3575_p10)
}
0x2dd1   :  { %s3579_s0 = scalar_lea.hbm %s4299_s10, 128 }
0x2dd2   :  { %p3580_p11 = scmp.ne.s32.totalorder %s4299_s10, %s3579_s0  ;;  %p3583_p12 = scmp.lt.u32.totalorder %s3579_s0, %s4299_s10 }
0x2dd4   :  { %p3585_p13 = pnand %p3583_p12, %p3580_p11 }
0x2dd6   :  { %3588 = shalt.err (!%p3585_p13)
}
0x2dd7   :  { %2518 = dma.vmem_to_hbm [thread:$0]  %s2516_s30, 128, %s4299_s10, [#allocation4]   ;;  %v2505_v50 = vpop.permute.xlu0 %2504 }
0x2dd8   :  { %2508 = vst.msk [vmem:[#allocation14 + $0x8] sm:$0xff] %vm214_vm2, %v2505_v50  ;;  %s3589_s22 = scalar_lea.vmem %s4254_s16, 256  ;;  %p3594_p1 = scmp.lt.s32.totalorder %s4254_s16, %s4254_s16 }
0x2dd9   :  { %p3590_p0 = scmp.ne.s32.totalorder %s4254_s16, %s3589_s22  ;;  %p3595_p2 = scmp.lt.s32.totalorder %s3589_s22, %s3589_s22 }
0x2ddb   :  { %p3596_p3 = por %p3595_p2, %p3594_p1 }
0x2ddd   :  { %p3597_p4 = pnand %p3596_p3, %p3590_p0 }
0x2ddf   :  { %3600 = shalt.err (!%p3597_p4)
}
0x2de0   :  { %s3601_s3 = scalar_lea.hbm %s4301_s12, 256 }
0x2de1   :  { %p3602_p5 = scmp.ne.s32.totalorder %s4301_s12, %s3601_s3  ;;  %p3605_p6 = scmp.lt.u32.totalorder %s3601_s3, %s4301_s12 }
0x2de3   :  { %p3607_p7 = pnand %p3605_p6, %p3602_p5 }
0x2de5   :  { %3610 = shalt.err (!%p3607_p7)
}
0x2de6   :  { %2542 = dma.vmem_to_hbm [thread:$0]  %s4254_s16, 256, %s4301_s12, [#allocation13], %s3622_s13, %s3622_s13, %s3623_s14  }
0x2de7   :  { %3617 = dma.done.wait [#allocation4], 128  }
0x2de8   :  { %3618 = vsyncadd [#allocation4], 4294967168 }
0x2de9   :  { %3619 = dma.done.wait [#allocation13], 512  }
0x2dea   :  { %3620 = vsyncadd [#allocation13], 4294966784 }
0x2deb   :  { %2552 = vsyncpa [#allocation3], 1 }
0x2dec   :  { %2553 = vsyncpa [#allocation6], 1 }
0x2ded   :  { %2554 = vsyncpa [#allocation9], 1 }
0x2dee   :  { %2555 = vsyncpa [#allocation4], 1 }
0x2def   :  { %2556 = vsyncpa [#allocation13], 1 }

</bundles_post_ra>
